<compile_context>
chip_gen: v5e
topology: v5e:2x2
jax: 0.10.0
libtpu: 0.0.40
codegen_flags: <defaults>
</compile_context>

<pallas_src>
import math
import functools
from types import SimpleNamespace

import jax
import jax.numpy as jnp
from jax.experimental import pallas as pl
from jax.experimental.pallas import tpu as pltpu


# ------------------------------ small helpers -------------------------------

# 32 MiB scoped-VMEM limit is safe on every generation (v5e/v6e: 128 MiB
# physical, v7x: 64 MiB); blocks below are ~2 MiB, so double-buffering fits
# comfortably on all of them.
_MOSAIC_VMEM_LIMIT = 32 * 1024 * 1024
_TILE_VMEM_TARGET = 2 << 20          # ~2 MiB of VMEM per block


def _round_up(a, m):
    return ((a + m - 1) // m) * m


def _row_tile(n_rows, vmem_bytes_per_row, target_bytes=_TILE_VMEM_TARGET):
    """Rows per grid step: sized by bytes (~target_bytes of VMEM per block), and
    capped so a 'parallel' 1-D grid keeps >= 2 programs whenever possible
    (v7x shards parallel grid axes across its 2 TensorCores)."""
    t = max(1, target_bytes // max(1, vmem_bytes_per_row))
    if n_rows >= 2:
        t = min(t, max(1, n_rows // 2))
    return max(1, min(t, n_rows))


def _gelu_tanh(x):
    # TODO(synk): PyTorch nn.GELU defaults to the exact erf form; the tanh
    # approximation is used here (guaranteed Mosaic lowering, EUP-friendly).
    # The backbone is a synthetic stand-in (the original module wraps an
    # arbitrary backbone), and the in-file reference uses the same form.
    c = math.sqrt(2.0 / math.pi)
    return 0.5 * x * (1.0 + jnp.tanh(c * (x + 0.044715 * (x * x * x))))


# ----------------------------- Pallas kernels -------------------------------

def _patch_embed_kernel(*refs, has_pos):
    """Patch-embed conv as matmuls with the (tiny, static) patch-row axis folded
    into the kernel body: one contiguous input DMA per tile, no accumulator
    scratch or init/finalize phases.  Bias + positional encoding are fused into
    the f32 epilogue; the pos encoding uses sin(theta + pi/2) == cos(theta) so
    there is exactly one transcendental per output lane and one lane-dense
    unmasked store."""
    if has_pos:
        x_ref, w_ref, b_ref, embs_ref, trig_ref, o_ref = refs
    else:
        x_ref, w_ref, b_ref, o_ref = refs

    tbh, ph, wp, kc = x_ref.shape
    e = o_ref.shape[-1]

    x = x_ref[...]                                   # (TBH, ph, Wp, KC) bf16
    w = w_ref[...]                                   # (ph, KC, E) bf16
    # dy-reduction unrolled in-register (ph == 2): bf16 operands, f32 accumulate.
    y = jnp.dot(x[:, 0].reshape(tbh * wp, kc), w[0],
                preferred_element_type=jnp.float32)
    for dy in range(1, ph):
        y = y + jnp.dot(x[:, dy].reshape(tbh * wp, kc), w[dy],
                        preferred_element_type=jnp.float32)
    y = (y + b_ref[...]).reshape(tbh, wp, e)

    if has_pos:
        trig = trig_ref[...]                         # (3, E) f32
        fy = trig[0:1, :].reshape(1, 1, e)           # 1/freq on y-half, 0 on x-half
        fx = trig[1:2, :].reshape(1, 1, e)           # 0 on y-half, 1/freq on x-half
        phs = trig[2:3, :].reshape(1, 1, e)          # +pi/2 on odd lanes (cos as shifted sin)
        embs = embs_ref[...]                         # (TBH, Wp, 2) f32
        yv = embs[:, :, 0:1]
        xv = embs[:, :, 1:2]
        y = y + jnp.sin(yv * fy + xv * fx + phs)     # fused '+ input_pos'

    o_ref[...] = y.astype(o_ref.dtype)


def pallas_patch_embed(x_rows, w, b, embs=None, trig=None):
    """x_rows: (R, ph, Wp, pw*C) bf16 with R = B*Hp;  w: (ph, pw*C, E) bf16;
    b: (E,) f32.  embs: optional (R, Wp, 2) f32 normalized (y, x) embeds and
    trig: (3, E) f32 [inv_freq_y | inv_freq_x | phase] for the fused positional
    encoding.  Returns (R, Wp, E) bf16 channels-last patch embeddings."""
    R, ph, Wp, KC = x_rows.shape
    E = w.shape[-1]
    # Per-row VMEM estimate (lane/sublane padding of bf16 tiles included):
    # padded bf16 image rows + f32 matmul/epilogue result + padded bf16 output.
    row_vmem = (ph * _round_up(Wp, 16) * _round_up(KC, 128) * 2
                + Wp * E * 4
                + _round_up(Wp, 16) * _round_up(E, 128) * 2)
    TBH = _row_tile(R, row_vmem)
    grid = (pl.cdiv(R, TBH),)

    in_specs = [
        pl.BlockSpec((TBH, ph, Wp, KC), lambda i: (i, 0, 0, 0)),
        pl.BlockSpec((ph, KC, E), lambda i: (0, 0, 0)),   # grid-invariant (resident)
        pl.BlockSpec((1, E), lambda i: (0, 0)),
    ]
    args = [x_rows, w, b.reshape(1, E)]
    has_pos = embs is not None
    if has_pos:
        in_specs += [pl.BlockSpec((TBH, Wp, 2), lambda i: (i, 0, 0)),
                     pl.BlockSpec((3, E), lambda i: (0, 0))]
        args += [embs, trig]

    return pl.pallas_call(
        functools.partial(_patch_embed_kernel, has_pos=has_pos),
        out_shape=jax.ShapeDtypeStruct((R, Wp, E), jnp.bfloat16),
        grid=grid,
        in_specs=in_specs,
        out_specs=pl.BlockSpec((TBH, Wp, E), lambda i: (i, 0, 0)),
        compiler_params=pltpu.CompilerParams(
            dimension_semantics=("parallel",),
            vmem_limit_bytes=_MOSAIC_VMEM_LIMIT),
    )(*args)


def _stage_kernel(x_ref, w_ref, b_ref, o_ref):
    """Fused 2x2 mean-pool -> pointwise linear -> GELU on channels-last bf16
    tiles.  Even/odd W positions arrive on lanes [0:E]/[E:2E] so the W-pool is a
    lane-slice add and the H-pool a leading-dim pair add; the 0.25 pool scale is
    folded into the bf16 weight, accumulation and the epilogue stay f32."""
    th2, wout, e2 = x_ref.shape
    e = e2 // 2
    th = th2 // 2
    x = x_ref[...]                                   # (2*TH, Wout, 2E) bf16
    xw = x[:, :, :e] + x[:, :, e:]                   # pool along W (even+odd lanes)
    xw = xw.reshape(th, 2, wout, e)
    pooled = (xw[:, 0] + xw[:, 1]).reshape(th * wout, e)   # pool along H
    y = jnp.dot(pooled, w_ref[...], preferred_element_type=jnp.float32)
    y = _gelu_tanh(y + b_ref[...])
    o_ref[...] = y.reshape(o_ref.shape).astype(o_ref.dtype)


def pallas_pool_linear_gelu(x, w, b):
    """x: (B, H, W, E) bf16 channels-last -> (B, H//2, W//2, E) bf16.
    w: (E, E) bf16 with the 0.25 pool scale folded in;  b: (E,) f32."""
    B, H, W, E = x.shape
    Hout, Wout = H // 2, W // 2
    # Even/odd W regrouped onto lanes; flattening (B, H) into one row axis lets
    # tiles span batch boundaries.  Both reshapes are free (row-major views).
    x_flat = x.reshape(B * H, Wout, 2 * E)
    R = B * Hout
    # Per-output-row VMEM estimate: 2 padded bf16 input rows + f32 matmul result
    # + bf16 pooled operand + padded bf16 output row.
    row_vmem = (2 * _round_up(Wout, 16) * _round_up(2 * E, 128) * 2
                + Wout * E * 4 + Wout * E * 2
                + _round_up(Wout, 16) * _round_up(E, 128) * 2)
    TH = _row_tile(R, row_vmem)
    grid = (pl.cdiv(R, TH),)

    out = pl.pallas_call(
        _stage_kernel,
        out_shape=jax.ShapeDtypeStruct((R, Wout, E), jnp.bfloat16),
        grid=grid,
        in_specs=[
            pl.BlockSpec((2 * TH, Wout, 2 * E), lambda i: (i, 0, 0)),
            pl.BlockSpec((E, E), lambda i: (0, 0)),
            pl.BlockSpec((1, E), lambda i: (0, 0)),
        ],
        out_specs=pl.BlockSpec((TH, Wout, E), lambda i: (i, 0, 0)),
        compiler_params=pltpu.CompilerParams(
            dimension_semantics=("parallel",),
            vmem_limit_bytes=_MOSAIC_VMEM_LIMIT),
    )(x_flat, w, b.reshape(1, E))
    return out.reshape(B, Hout, Wout, E)


# -------------------------------- JAX glue ----------------------------------

def nearest_resize(x, h, w):
    """F.interpolate(mode='nearest') semantics on (B, H, W).  Tiny mask gather,
    left to XLA (no clean/valuable Pallas equivalent)."""
    B, H, W = x.shape
    ri = jnp.minimum(jnp.floor(jnp.arange(h) * (H / h)).astype(jnp.int32), H - 1)
    ci = jnp.minimum(jnp.floor(jnp.arange(w) * (W / w)).astype(jnp.int32), W - 1)
    return x[:, ri[:, None], ci[None, :]]


class SimpleViTBackbone:
    """Synthetic ViT-style backbone (deterministic in-script weights), kept
    channels-last and bf16-in-HBM internally: patch-embed conv (Pallas kernel)
    with fused positional-encoding add, then stages of fused 2x2 mean-pool +
    pointwise linear + GELU.  All levels share the channel dim so the
    prepare_inps concat over levels is valid (as the PyTorch code requires)."""

    def __init__(self, key, in_chans, embed_dim, patch_size, num_stages):
        self.patch_embed = SimpleNamespace(patch_size=patch_size)
        self.embed_dim = embed_dim
        self.in_chans = in_chans
        ph, pw = patch_size
        ks = jax.random.split(key, 2 * num_stages)
        # Patch-embed conv weight laid out (ph, pw*C, E), row order (dy, dx, c);
        # stored bf16 (MXU operand dtype).  Bias stays f32 (added in f32 epilogue).
        self.w_patch = (0.02 * jax.random.normal(
            ks[0], (ph, pw * in_chans, embed_dim))).astype(jnp.bfloat16)
        self.b_patch = jnp.zeros((embed_dim,), jnp.float32)
        self.stage_params = []
        for s in range(1, num_stages):
            w = 0.02 * jax.random.normal(ks[2 * s], (embed_dim, embed_dim))
            b = 0.02 * jax.random.normal(ks[2 * s + 1], (embed_dim,))
            # 2x2 mean-pool scale folded into the weight once at init; bf16 MXU operand.
            self.stage_params.append(((0.25 * w).astype(jnp.bfloat16),
                                      b.astype(jnp.float32)))

    def __call__(self, images, pos_embs=None, pos_trig=None):
        """images: NCHW (B,C,H,W) f32; pos_embs: (B,Hp,Wp,2) f32 normalized
        (y, x) embeds (or None); pos_trig: (3, E) f32 sin/cos tables.
        Returns channels-last bf16 features [(B, H/2^i, W/2^i, E) for i=1..]."""
        B, C, H, W = images.shape
        ph, pw = self.patch_embed.patch_size
        Hp, Wp = H // ph, W // pw
        E = self.embed_dim
        # One NCHW -> NHWC layout pass with the f32->bf16 cast fused into it; the
        # (B*Hp, ph, Wp, pw*C) patch-row view is then a free row-major reshape.
        x_rows = jnp.transpose(images, (0, 2, 3, 1)).astype(jnp.bfloat16)
        x_rows = x_rows.reshape(B * Hp, ph, Wp, pw * C)
        embs_rows = None if pos_embs is None else pos_embs.reshape(B * Hp, Wp, 2)
        y = pallas_patch_embed(x_rows, self.w_patch, self.b_patch,
                               embs_rows, pos_trig)
        feats = [y.reshape(B, Hp, Wp, E)]            # bf16, stride 2
        for (ws, bs) in self.stage_params:
            feats.append(pallas_pool_linear_gelu(feats[-1], ws, bs))
        return feats                                  # strides 2, 4, 8, ...


class VisionTransformerPallas:
    """JAX/Pallas port of VisionTransformer.forward (channels-last internally)."""

    def __init__(self, backbone, strides, wo_source_pos_encod=False):
        self.backbone, self.backbone_dims = backbone
        self.feat_ids = [int(math.log(s, 2)) - 1 for s in strides]
        self.wo_source_pos_encod = wo_source_pos_encod
        input_dim = self.backbone_dims[1]
        pos_dim = input_dim // 2                     # PositionalEncoding(dim=input_dim//2)
        temperature = 10000.0
        i = jnp.arange(pos_dim, dtype=jnp.float32)
        # freq = T ** (2*floor(i/2) / floor(dim/2)); exactly the reference's
        # `_floor_div(dim, 2)` with dim == pos_dim (i.e. divide by pos_dim//2).
        self.freq = temperature ** (2.0 * jnp.floor(i / 2.0) / (pos_dim // 2))
        # Tables for the fused (patch-embed epilogue) pos computation:
        #   out[j] = sin(emb_sel * inv_freq[j] + phase[j])
        # cos lanes folded in as a +pi/2 phase on odd lanes; the first pos_dim
        # lanes take y_embed, the last pos_dim lanes take x_embed.
        inv = 1.0 / self.freq
        zero = jnp.zeros_like(inv)
        phase = (jnp.arange(pos_dim, dtype=jnp.float32) % 2.0) * (math.pi / 2.0)
        self.pos_trig = jnp.stack([
            jnp.concatenate([inv, zero]),            # multiplies y_embed
            jnp.concatenate([zero, inv]),            # multiplies x_embed
            jnp.concatenate([phase, phase]),         # +pi/2 on odd lanes -> cos
        ]).astype(jnp.float32)                       # (3, input_dim)

    def __call__(self, images, masks):
        patch_size = self.backbone.patch_embed.patch_size
        if self.wo_source_pos_encod:
            feats_all = self.backbone(images)
        else:
            embs = self.compute_input_pos(patch_size, masks)   # (B, Hp, Wp, 2)
            feats_all = self.backbone(images, embs, self.pos_trig)
        feats = feats_all[self.feat_ids[0]:self.feat_ids[-1] + 1]
        return self.prepare_inps(feats, masks)

    def compute_input_pos(self, patch_size, mask):
        """Normalized (y, x) embeds -- the tiny, data-dependent part of
        PositionalEncoding (B*h*w*2 floats).  The E-wide sin/cos expansion is
        fused into the patch-embed kernel epilogue, which removes the
        (B, h, w, E) positional-encoding HBM write + read round trip."""
        _, H, W = mask.shape
        h, w = H // patch_size[0], W // patch_size[1]
        mask_resize = nearest_resize(mask.astype(jnp.float32), h, w).astype(bool)
        not_mask = jnp.logical_not(mask_resize).astype(jnp.float32)
        eps = 1e-6
        scale = 2.0 * math.pi
        y_embed = jnp.arange(1, h + 1, dtype=jnp.float32).reshape(1, h, 1) * not_mask
        x_embed = jnp.arange(1, w + 1, dtype=jnp.float32).reshape(1, 1, w) * not_mask
        y_embed = (y_embed - 0.5) / (y_embed.max(axis=1, keepdims=True) + eps) * scale
        x_embed = (x_embed - 0.5) / (x_embed.max(axis=2, keepdims=True) + eps) * scale
        return jnp.stack([y_embed, x_embed], axis=-1)          # (B, h, w, 2) f32

    def prepare_inps(self, feats, mask):
        feats_encode, masks, shapes = [], [], []
        mask_f = mask.astype(jnp.float32)
        for feat in feats:                           # (B, h, w, E) channels-last bf16
            B, h, w, E = feat.shape
            m = nearest_resize(mask_f, h, w).astype(bool)
            masks.append(m)
            # channels-last flatten == PyTorch flatten(2).transpose(1,2), no transpose
            feats_encode.append(feat.reshape(B, h * w, E))
            shapes.append((h, w))
        feats_out = jnp.concatenate(feats_encode, axis=1).astype(jnp.float32)
        mask_out = jnp.concatenate([m.reshape(m.shape[0], -1) for m in masks], axis=1)
        # TODO(synk): PyTorch returns int64 shapes; JAX default (x64 off) gives int32.
        shapes_out = jnp.asarray(shapes, dtype=jnp.int32)
        return feats_out, mask_out, shapes_out


# --------------------------- pure-JAX reference ------------------------------

def _reference_pos(not_mask, freq):
    """Verbatim transcription of PositionalEncoding.forward (normalize=True),
    returned channels-last (B, h, w, 2D) in f32 -- validates the kernel's
    sin(theta + pi/2) phase trick against the sin/cos interleave."""
    B, h, w = not_mask.shape
    eps = 1e-6
    scale = 2.0 * math.pi
    y_embed = jnp.arange(1, h + 1, dtype=jnp.float32).reshape(1, h, 1) * not_mask
    x_embed = jnp.arange(1, w + 1, dtype=jnp.float32).reshape(1, 1, w) * not_mask
    y_embed = (y_embed - 0.5) / (y_embed.max(axis=1, keepdims=True) + eps) * scale
    x_embed = (x_embed - 0.5) / (x_embed.max(axis=2, keepdims=True) + eps) * scale
    pos_x = x_embed[..., None] / freq
    pos_y = y_embed[..., None] / freq
    pos_x = jnp.stack([jnp.sin(pos_x[..., 0::2]), jnp.cos(pos_x[..., 1::2])],
                      axis=4).reshape(B, h, w, -1)
    pos_y = jnp.stack([jnp.sin(pos_y[..., 0::2]), jnp.cos(pos_y[..., 1::2])],
                      axis=4).reshape(B, h, w, -1)
    return jnp.concatenate([pos_y, pos_x], axis=3)


def reference_forward(model, images, masks):
    """Pure-JAX reference mirroring the kernel's dtype handoffs (bf16 HBM
    activations / MXU operands, f32 accumulation + epilogues) so real kernel
    bugs show up well above the tolerance."""
    bb = model.backbone
    ph, pw = bb.patch_embed.patch_size
    B, C, H, W = images.shape
    Hp, Wp = H // ph, W // pw
    E = bb.embed_dim
    mask_r = nearest_resize(masks.astype(jnp.float32), Hp, Wp).astype(bool)
    not_mask = jnp.logical_not(mask_r).astype(jnp.float32)
    pos = _reference_pos(not_mask, model.freq)                 # (B, Hp, Wp, E) f32
    x_rows = (jnp.transpose(images, (0, 2, 3, 1)).astype(jnp.bfloat16)
              .reshape(B * Hp, ph, Wp, pw * C))
    acc = jnp.zeros((B * Hp, Wp, E), jnp.float32)
    for dy in range(ph):
        acc = acc + jnp.einsum('rwk,ke->rwe', x_rows[:, dy], bb.w_patch[dy],
                               preferred_element_type=jnp.float32)
    y = acc + bb.b_patch + pos.reshape(B * Hp, Wp, E)
    feats = [y.astype(jnp.bfloat16).reshape(B, Hp, Wp, E)]
    for (ws, bs) in bb.stage_params:
        p = feats[-1]                                          # bf16
        Bc, Hc, Wc, Ec = p.shape
        pf = p.reshape(Bc, Hc // 2, 2, Wc // 2, 2, Ec)
        # same add grouping as the kernel: (even_w + odd_w) per row, then rows
        pooled = ((pf[:, :, 0, :, 0] + pf[:, :, 0, :, 1])
                  + (pf[:, :, 1, :, 0] + pf[:, :, 1, :, 1]))
        z = jnp.einsum('bhwe,ef->bhwf', pooled, ws,
                       preferred_element_type=jnp.float32) + bs
        feats.append(_gelu_tanh(z).astype(jnp.bfloat16))
    sel = feats[model.feat_ids[0]:model.feat_ids[-1] + 1]
    return model.prepare_inps(sel, masks)


# ----------------------------------- main ------------------------------------

if __name__ == "__main__":
    key = jax.random.PRNGKey(0)
    k_img, k_bb, k_mask = jax.random.split(key, 3)

    B, C, H, W = 2, 3, 16, 16
    embed_dim = 128          # multiple of 128 -> lane-dense outputs in every kernel
    patch_size = (2, 2)

    images = jax.random.normal(k_img, (B, C, H, W), dtype=jnp.float32)
    masks = jax.random.uniform(k_mask, (B, H, W)) > 0.8     # bool, True = padded

    backbone_model = SimpleViTBackbone(
        k_bb, in_chans=C, embed_dim=embed_dim, patch_size=patch_size, num_stages=3)
    backbone_dims = [C, embed_dim, embed_dim, embed_dim]

    # strides [4, 8] -> select the /4 and /8 feature levels
    model = VisionTransformerPallas((backbone_model, backbone_dims), strides=[4, 8])

    feats, mask_out, shapes = model(images, masks)
    jax.block_until_ready((feats, mask_out, shapes))

    # shape sanity: (B, 4*4 + 2*2, E), (B, 20), (2 levels, 2)
    assert feats.shape == (B, 4 * 4 + 2 * 2, embed_dim)
    assert mask_out.shape == (B, feats.shape[1])
    assert shapes.shape == (2, 2)

    # numerical sanity vs the dtype-mirrored pure-JAX reference (rtol absorbs a
    # single bf16 ULP flip; real layout/indexing bugs produce O(0.1-1) errors)
    feats_ref, mask_ref, shapes_ref = reference_forward(model, images, masks)
    jax.block_until_ready((feats_ref, mask_ref, shapes_ref))
    max_err = float(jnp.max(jnp.abs(feats - feats_ref)))
    assert bool(jnp.allclose(feats, feats_ref, rtol=1e-2, atol=1e-2)), (
        f"feature mismatch vs reference: max abs err {max_err}")
    assert bool(jnp.array_equal(mask_out, mask_ref))
    assert bool(jnp.array_equal(shapes, shapes_ref))

    print("KERNEL_OK")
</pallas_src>

<mosaic_0001>
module attributes {stable_mosaic.version = 11 : i64} {
  func.func @_patch_embed_kernel(%arg0: i32, %arg1: memref<8x2x8x6xbf16, #tpu.memory_space<vmem>>, %arg2: memref<2x6x128xbf16, #tpu.memory_space<vmem>>, %arg3: memref<1x128xf32, #tpu.memory_space<vmem>>, %arg4: memref<8x8x2xf32, #tpu.memory_space<vmem>>, %arg5: memref<3x128xf32, #tpu.memory_space<vmem>>, %arg6: memref<8x8x128xbf16, #tpu.memory_space<vmem>>) attributes {dimension_semantics = [#tpu.dimension_semantics<parallel>], iteration_bounds = array<i64: 2>, scalar_prefetch = 0 : i64, scratch_operands = 0 : i64, tpu.core_type = #tpu.core_type<tc>, window_params = [{transform_indices = @transform_0, window_bounds = array<i64: 8, 2, 8, 6>}, {pipeline_mode = #tpu.pipeline_mode<synchronous>, transform_indices = @transform_1, window_bounds = array<i64: 2, 6, 128>}, {pipeline_mode = #tpu.pipeline_mode<synchronous>, transform_indices = @transform_2, window_bounds = array<i64: 1, 128>}, {transform_indices = @transform_3, window_bounds = array<i64: 8, 8, 2>}, {pipeline_mode = #tpu.pipeline_mode<synchronous>, transform_indices = @transform_4, window_bounds = array<i64: 3, 128>}, {transform_indices = @transform_5, window_bounds = array<i64: 8, 8, 128>}]} {
    %c0 = arith.constant 0 : index
    %c0_0 = arith.constant 0 : index
    %c0_1 = arith.constant 0 : index
    %c0_2 = arith.constant 0 : index
    %0 = vector.load %arg1[%c0, %c0_0, %c0_1, %c0_2] : memref<8x2x8x6xbf16, #tpu.memory_space<vmem>>, vector<8x2x8x6xbf16>
    %c0_3 = arith.constant 0 : index
    %c0_4 = arith.constant 0 : index
    %c0_5 = arith.constant 0 : index
    %1 = vector.load %arg2[%c0_3, %c0_4, %c0_5] : memref<2x6x128xbf16, #tpu.memory_space<vmem>>, vector<2x6x128xbf16>
    %2 = vector.extract_strided_slice %0 {offsets = [0, 0, 0, 0], sizes = [8, 1, 8, 6], strides = [1, 1, 1, 1]} : vector<8x2x8x6xbf16> to vector<8x1x8x6xbf16>
    %3 = vector.shape_cast %2 : vector<8x1x8x6xbf16> to vector<8x8x6xbf16>
    %4 = vector.shape_cast %3 : vector<8x8x6xbf16> to vector<64x6xbf16>
    %5 = vector.extract_strided_slice %1 {offsets = [0, 0, 0], sizes = [1, 6, 128], strides = [1, 1, 1]} : vector<2x6x128xbf16> to vector<1x6x128xbf16>
    %6 = vector.shape_cast %5 : vector<1x6x128xbf16> to vector<6x128xbf16>
    %cst = arith.constant dense<0.000000e+00> : vector<64x128xf32>
    %7 = tpu.matmul %4, %6, %cst {dimension_numbers = #tpu.dot_dimension_numbers<[1], [0], [0], [1], [0, 0, 1, 1], [], []>} : vector<64x6xbf16>, vector<6x128xbf16>, vector<64x128xf32> -> vector<64x128xf32>
    %8 = vector.extract_strided_slice %0 {offsets = [0, 1, 0, 0], sizes = [8, 1, 8, 6], strides = [1, 1, 1, 1]} : vector<8x2x8x6xbf16> to vector<8x1x8x6xbf16>
    %9 = vector.shape_cast %8 : vector<8x1x8x6xbf16> to vector<8x8x6xbf16>
    %10 = vector.shape_cast %9 : vector<8x8x6xbf16> to vector<64x6xbf16>
    %11 = vector.extract_strided_slice %1 {offsets = [1, 0, 0], sizes = [1, 6, 128], strides = [1, 1, 1]} : vector<2x6x128xbf16> to vector<1x6x128xbf16>
    %12 = vector.shape_cast %11 : vector<1x6x128xbf16> to vector<6x128xbf16>
    %cst_6 = arith.constant dense<0.000000e+00> : vector<64x128xf32>
    %13 = tpu.matmul %10, %12, %cst_6 {dimension_numbers = #tpu.dot_dimension_numbers<[1], [0], [0], [1], [0, 0, 1, 1], [], []>} : vector<64x6xbf16>, vector<6x128xbf16>, vector<64x128xf32> -> vector<64x128xf32>
    %14 = arith.addf %7, %13 : vector<64x128xf32>
    %c0_7 = arith.constant 0 : index
    %c0_8 = arith.constant 0 : index
    %15 = vector.load %arg3[%c0_7, %c0_8] : memref<1x128xf32, #tpu.memory_space<vmem>>, vector<1x128xf32>
    %16 = vector.broadcast %15 : vector<1x128xf32> to vector<64x128xf32>
    %17 = arith.addf %14, %16 : vector<64x128xf32>
    %18 = vector.shape_cast %17 : vector<64x128xf32> to vector<8x8x128xf32>
    %c0_9 = arith.constant 0 : index
    %c0_10 = arith.constant 0 : index
    %19 = vector.load %arg5[%c0_9, %c0_10] : memref<3x128xf32, #tpu.memory_space<vmem>>, vector<3x128xf32>
    %20 = vector.extract_strided_slice %19 {offsets = [0, 0], sizes = [1, 128], strides = [1, 1]} : vector<3x128xf32> to vector<1x128xf32>
    %21 = vector.shape_cast %20 : vector<1x128xf32> to vector<1x1x128xf32>
    %22 = vector.extract_strided_slice %19 {offsets = [1, 0], sizes = [1, 128], strides = [1, 1]} : vector<3x128xf32> to vector<1x128xf32>
    %23 = vector.shape_cast %22 : vector<1x128xf32> to vector<1x1x128xf32>
    %24 = vector.extract_strided_slice %19 {offsets = [2, 0], sizes = [1, 128], strides = [1, 1]} : vector<3x128xf32> to vector<1x128xf32>
    %25 = vector.shape_cast %24 : vector<1x128xf32> to vector<1x1x128xf32>
    %c0_11 = arith.constant 0 : index
    %c0_12 = arith.constant 0 : index
    %c0_13 = arith.constant 0 : index
    %26 = vector.load %arg4[%c0_11, %c0_12, %c0_13] : memref<8x8x2xf32, #tpu.memory_space<vmem>>, vector<8x8x2xf32>
    %27 = vector.extract_strided_slice %26 {offsets = [0, 0, 0], sizes = [8, 8, 1], strides = [1, 1, 1]} : vector<8x8x2xf32> to vector<8x8x1xf32>
    %28 = vector.extract_strided_slice %26 {offsets = [0, 0, 1], sizes = [8, 8, 1], strides = [1, 1, 1]} : vector<8x8x2xf32> to vector<8x8x1xf32>
    %29 = vector.broadcast %27 : vector<8x8x1xf32> to vector<8x8x128xf32>
    %30 = vector.broadcast %21 : vector<1x1x128xf32> to vector<8x8x128xf32>
    %31 = arith.mulf %29, %30 : vector<8x8x128xf32>
    %32 = vector.broadcast %28 : vector<8x8x1xf32> to vector<8x8x128xf32>
    %33 = vector.broadcast %23 : vector<1x1x128xf32> to vector<8x8x128xf32>
    %34 = arith.mulf %32, %33 : vector<8x8x128xf32>
    %35 = arith.addf %31, %34 : vector<8x8x128xf32>
    %36 = vector.broadcast %25 : vector<1x1x128xf32> to vector<8x8x128xf32>
    %37 = arith.addf %35, %36 : vector<8x8x128xf32>
    %38 = math.sin %37 : vector<8x8x128xf32>
    %39 = arith.addf %18, %38 : vector<8x8x128xf32>
    %40 = arith.truncf %39 : vector<8x8x128xf32> to vector<8x8x128xbf16>
    %c0_14 = arith.constant 0 : index
    %c0_15 = arith.constant 0 : index
    %c0_16 = arith.constant 0 : index
    %41 = vector.load %arg6[%c0_14, %c0_15, %c0_16] : memref<8x8x128xbf16, #tpu.memory_space<vmem>>, vector<8x8x128xbf16>
    tpu.vector_store %arg6[%c0_14, %c0_15, %c0_16], %40 {strides = array<i32>} : memref<8x8x128xbf16, #tpu.memory_space<vmem>>, vector<8x8x128xbf16>,
    return
  }
  func.func @transform_0(%arg0: i32) -> (i32, i32, i32, i32) {
    %c0_i32 = arith.constant 0 : i32
    %c0_i32_0 = arith.constant 0 : i32
    %c0_i32_1 = arith.constant 0 : i32
    %c0_i32_2 = arith.constant 0 : i32
    return %arg0, %c0_i32, %c0_i32_0, %c0_i32_1 : i32, i32, i32, i32
  }
  func.func @transform_1(%arg0: i32) -> (i32, i32, i32) {
    %c0_i32 = arith.constant 0 : i32
    %c0_i32_0 = arith.constant 0 : i32
    %c0_i32_1 = arith.constant 0 : i32
    %c0_i32_2 = arith.constant 0 : i32
    return %c0_i32, %c0_i32_0, %c0_i32_1 : i32, i32, i32
  }
  func.func @transform_2(%arg0: i32) -> (i32, i32) {
    %c0_i32 = arith.constant 0 : i32
    %c0_i32_0 = arith.constant 0 : i32
    %c0_i32_1 = arith.constant 0 : i32
    return %c0_i32, %c0_i32_0 : i32, i32
  }
  func.func @transform_3(%arg0: i32) -> (i32, i32, i32) {
    %c0_i32 = arith.constant 0 : i32
    %c0_i32_0 = arith.constant 0 : i32
    %c0_i32_1 = arith.constant 0 : i32
    return %arg0, %c0_i32, %c0_i32_0 : i32, i32, i32
  }
  func.func @transform_4(%arg0: i32) -> (i32, i32) {
    %c0_i32 = arith.constant 0 : i32
    %c0_i32_0 = arith.constant 0 : i32
    %c0_i32_1 = arith.constant 0 : i32
    return %c0_i32, %c0_i32_0 : i32, i32
  }
  func.func @transform_5(%arg0: i32) -> (i32, i32, i32) {
    %c0_i32 = arith.constant 0 : i32
    %c0_i32_0 = arith.constant 0 : i32
    %c0_i32_1 = arith.constant 0 : i32
    return %arg0, %c0_i32, %c0_i32_0 : i32, i32, i32
  }
}

</mosaic_0001>

<bundles_post_ra>
// kernel: tpu_custom_call.1
= control target key start
LH: loop header
LB: loop body
LE: loop exit
PB: predicated region body
PF: predicated region fallthrough
CT: control target
= control target key end

     0   :  { %10 = vsyncpa [#allocation3], 0  ;;  %s3488_s0 = inlined_call_operand.vmem [shape: bf16[16,2,8,6], index: 0, kind: input, shape index: {}]   ;;  %s3489_s1 = inlined_call_operand.vmem [shape: bf16[2,6,128], index: 1, kind: input, shape index: {}]   ;;  %s3490_s2 = inlined_call_operand.vmem [shape: f32[1,128], index: 2, kind: input, shape index: {}]   ;;  %s3491_s3 = inlined_call_operand.vmem [shape: f32[16,8,2], index: 3, kind: input, shape index: {}]   ;;  %s3492_s4 = inlined_call_operand.vmem [shape: f32[3,128], index: 4, kind: input, shape index: {}]   ;;  %s3493_s5 = inlined_call_operand.hbm [shape: bf16[16,8,128], index: 5, kind: output, shape index: {}]  }
   0x1   :  { %12 = vsyncpa [#allocation3 + $0x1], 0  ;;  %s2157_s18 = smov 0   ;;  %s2159_s19 = smov 0  }
   0x2   :  { %s2161_s20 = smov 0   ;;  %s2163_s21 = smov 0  }
   0x3 LB: > { %s2178_s22 = sadd.s32 4294967295, %s2115_s21   ;;  %s1882_s23 = sadd.s32 4294967294, %s2115_s21   ;;  %s2115_s21 = sphi %s2163_s21, %s3610_s21   ;;  %s2111_s20 = sphi %s2161_s20, %s3609_s20   ;;  %s2107_s19 = sphi %s2159_s19, %s3608_s19   ;;  %s2103_s18 = sphi %s2157_s18, %s3607_s18  }
   0x4   : > { %s2182_s24 = sadd.s32 1, %s2115_s21   ;;  %s140_s25 = sadd.s32 1, %s2111_s20 }
   0x5   : > { %s137_s26 = ssub.s32 %s2115_s21, %s2182_s24  ;;  %p150_p0 = scmp.ne.s32.totalorder %s2111_s20, %s2107_s19 }
   0x6   : > { %p138_p1 = scmp.eq.s32.totalorder %s137_s26, 0  ;;  %p151_p2 = scmp.eq.s32.totalorder %s2178_s22, 1 }
   0x7   : > { %p156_p3 = scmp.ne.s32.totalorder %s2107_s19, %s2103_s18  ;;  %p157_p4 = scmp.eq.s32.totalorder %s1882_s23, 1 }
   0x8   : > { %s2193_s27 = scalar_select %p138_p1, %s2111_s20, %s140_s25  }
   0x9   : > { %p2195_p5 = por %p151_p2, %p150_p0  ;;  %p2199_p6 = por %p157_p4, %p156_p3 }
   0xa   : > { %p1885_p7 = scmp.ge.s32.totalorder %s2115_s21, 1  ;;  %p203_p8 = scmp.lt.s32.totalorder %s2115_s21, 3 }
   0xc   : > { %p204_p9 = pnand %p1885_p7, %p203_p8 }
   0xe   : > { %207 = sbr.rel (%p204_p9) target bundleno = 516 (0x204), region = 40 }
  0x13   : > { %s1887_s30 = sshll.u32 %s2178_s22, 3  ;;  %v3501_v0 = vmov 0   ;;  %v269_v7 = vld [vmem:[%s3489_s1 + $0x4] sm:$0x7]  ;;  %vm303_vm0 = vcmask 1042432   ;;  %vm290_vm1 = vcmask 48128  }
  0x14   : > { %2047 = vset.pattern.permute.xlu2 %v3501_v0  ;;  %2046 = vset.pattern.permute.xlu1 %v3501_v0  ;;  %p238_p10 = scmp.lt.s32.totalorder %s1887_s30, 15  ;;  %v268_v8 = vld [vmem:[%s3489_s1] sm:$0x7]  ;;  %v305_v9 = vsel %vm303_vm0, %v269_v7, 0  ;;  %v2118_v25 = vmov 1   ;;  %s1970_s10 = sshll.u32 %s2178_s22, 5 }
  0x15   : > { %2045 = vset.pattern.permute.xlu0 %v3501_v0  ;;  %v369_v10 = vsel %vm303_vm0, %v268_v8, 0  ;;  %314 = vmatpush.bf16.msra.mxu0 %v305_v9  ;;  %v412_v38 = vld [vmem:[%s3492_s4] sm:$0x7]  ;;  %s1804_s13 = scalar_lea.hbm %s3493_s5, %s1970_s10  ;;  %s2073_s26 = scalar_lea.hbm %s3493_s5, 64 }
  0x16   : > { %s3612_s30 = smov (!%p238_p10, %s1887_s30), 15  ;;  %378 = vmatpush.bf16.msra.mxu1 %v369_v10  ;;  %1994 = vmatpush.bf16.msra.mxu2 %v305_v9  ;;  %v461_v39 = vperm.slane %v412_v38, 0  ;;  %v2262_v45 = vperm.slane %v412_v38, 1  ;;  %v2265_v49 = vperm.slane %v412_v38, 2  ;;  %s1807_s14 = sshll.u32 %s1804_s13, 4  ;;  %s1808_s14 = int_to_ptr.hbm [resolvable:$true] %s1807_s14 }
  0x17   : > { %s1961_s6 = sshll.u32 %s3612_s30, 3  ;;  %1995 = vmatpush.bf16.msra.mxu3 %v369_v10  ;;  %s234_s30 = sand.u32 1, %s2107_s19  }
  0x18   : > { %s2212_s9 = scalar_lea.vmem %s3491_s3, %s1961_s6  ;;  %s2223_s12 = scalar_lea.vmem %s3488_s0, %s1961_s6 }
  0x19   : > { %v417_v1 = vld [vmem:[%s2212_s9 + $0x20] sm:$0xff]  ;;  %v415_v2 = vld [vmem:[%s2212_s9 + $0x10] sm:$0xff]  ;;  %v418_v4 = vld [vmem:[%s2212_s9 + $0x28] sm:$0xff]  ;;  %s1886_s6 = sshll.u32 %s234_s30, 5  ;;  %s1793_s15 = scalar_lea.sflag [#allocation3], %s234_s30 }
  0x1a   : > { %v413_v3 = vld [vmem:[%s2212_s9] sm:$0xff]  ;;  %443 = vperm.xlu2 %2047, %v417_v1   ;;  %433 = vperm.xlu1 %2046, %v415_v2   ;;  %v416_v5 = vld [vmem:[%s2212_s9 + $0x18] sm:$0xff]  ;;  %v414_v6 = vld [vmem:[%s2212_s9 + $0x8] sm:$0xff]  ;;  %s2923_s7 = scalar_lea.vmem [#allocation2], %s1886_s6  ;;  %s2067_s16 = sshra.s32 %s1808_s14, 4  ;;  %s2068_s16 = int_to_ptr.hbm [resolvable:$true] %s2067_s16 }
  0x1b   : > { %423 = vperm.xlu0 %2045, %v413_v3   ;;  %v1894_v11 = vld [vmem:[%s2223_s12 + $0x4] sm:$0xf]  ;;  %v1963_v12 = vld [vmem:[%s2223_s12 + $0x8] sm:$0xf0]  ;;  %v1914_v14 = vld [vmem:[%s2223_s12] sm:$0xf]  ;;  %p2074_p0 = scmp.lt.s32.totalorder %s2068_s16, %s3493_s5 }
  0x1c   : > { %v1895_v13 = vor.u32 %v1963_v12, %v1894_v11  ;;  %v1962_v15 = vld [vmem:[%s2223_s12 + $0x4] sm:$0xf0]  ;;  %v1902_v16 = vld [vmem:[%s2223_s12 + $0x24] sm:$0xf]  ;;  %v1967_v18 = vld [vmem:[%s2223_s12 + $0x28] sm:$0xf0] }
  0x1d   : > { %v1915_v17 = vor.u32 %v1962_v15, %v1914_v14  ;;  %v1922_v19 = vld [vmem:[%s2223_s12 + $0x20] sm:$0xf]  ;;  %v1966_v20 = vld [vmem:[%s2223_s12 + $0x24] sm:$0xf0]  ;;  %v420_v21 = vld [vmem:[%s2212_s9 + $0x38] sm:$0xff]  ;;  %v1903_v22 = vor.u32 %v1967_v18, %v1902_v16  ;;  %s1805_s22 = sshll.u32 %s2923_s7, 4  ;;  %s1806_s22 = int_to_ptr.vmem [resolvable:$true] %s1805_s22 }
  0x1e   : > { %v1923_v23 = vor.u32 %v1966_v20, %v1922_v19  ;;  %v419_v24 = vld [vmem:[%s2212_s9 + $0x30] sm:$0xff]  ;;  %1908 = vmatmul.msk.bf16.vlgmr.msra.gmra.mxu0 %vm290_vm1, %v1895_v13  ;;  %v1965_v27 = vld [vmem:[%s2223_s12 + $0x18] sm:$0xf0]  ;;  %v1964_v29 = vld [vmem:[%s2223_s12 + $0x14] sm:$0xf0]  ;;  %s2069_s17 = scalar_lea.hbm %s2068_s16, 32 }
  0x1f   : > { %1928 = vmatmul.msk.bf16.vlgmr.msra.gmra.mxu1 %vm290_vm1, %v1915_v17  ;;  %1910 = vmatmul.msk.bf16.vlgmr.msra.gmra.mxu2 %vm290_vm1, %v1903_v22  ;;  %v1898_v26 = vld [vmem:[%s2223_s12 + $0x14] sm:$0xf]  ;;  %v1918_v28 = vld [vmem:[%s2223_s12 + $0x10] sm:$0xf]  ;;  %v1969_v33 = vld [vmem:[%s2223_s12 + $0x38] sm:$0xf0]  ;;  %p2070_p11 = scmp.ne.s32.totalorder %s2068_s16, %s2069_s17  ;;  %p2075_p1 = scmp.lt.s32.totalorder %s2073_s26, %s2069_s17 }
  0x20   : > { %1930 = vmatmul.msk.bf16.vlgmr.msra.gmra.mxu3 %vm290_vm1, %v1923_v23  ;;  %v1899_v30 = vor.u32 %v1965_v27, %v1898_v26  ;;  %v1919_v31 = vor.u32 %v1964_v29, %v1918_v28  ;;  %v1906_v32 = vld [vmem:[%s2223_s12 + $0x34] sm:$0xf]  ;;  %v1926_v34 = vld [vmem:[%s2223_s12 + $0x30] sm:$0xf]  ;;  %v1968_v36 = vld [vmem:[%s2223_s12 + $0x34] sm:$0xf0] }
  0x21   : > { %v1907_v35 = vor.u32 %v1969_v33, %v1906_v32  ;;  %v1927_v37 = vor.u32 %v1968_v36, %v1926_v34  ;;  %v3503_v32 = vmov 1326507024   ;;  %p2071_p12 = pnand %p2070_p11, %p2195_p5  ;;  %p2076_p2 = por %p2075_p1, %p2074_p0 }
  0x22   : > { %448 = vperm.xlu2 %2047, %v418_v4   ;;  %438 = vperm.xlu1 %2046, %v416_v5  }
  0x23   : > { %428 = vperm.xlu0 %2045, %v414_v6   ;;  %p2072_p13 = pneg %p2071_p12 }
  0x25   : > { %p2077_p3 = pnand %p2076_p2, %p2072_p13 }
  0x2a   : > { %2048 = vset.pattern.permute.xlu2 %v2118_v25  ;;  %458 = vperm.xlu1 %2046, %v420_v21  }
  0x2b   : > { %453 = vperm.xlu0 %2045, %v419_v24   ;;  %471 = vperm.xlu2 %2048, %v413_v3  }
  0x2e   : > { %1909 = vmatmul.msk.bf16.gmra.mxu0 %vm290_vm1, %v1899_v30  ;;  %v3525_v30 = vmov 920167782  }
  0x2f   : > { %1929 = vmatmul.msk.bf16.gmra.mxu1 %vm290_vm1, %v1919_v31  ;;  %1911 = vmatmul.msk.bf16.gmra.mxu2 %vm290_vm1, %v1907_v35 }
  0x30   : > { %1931 = vmatmul.msk.bf16.gmra.mxu3 %vm290_vm1, %v1927_v37 }
  0x32   : > { %2050 = vset.pattern.permute.xlu1 %v2118_v25 }
  0x33   : > { %2049 = vset.pattern.permute.xlu0 %v2118_v25  ;;  %479 = vperm.xlu1 %2050, %v415_v2  }
  0x34   : > { %483 = vperm.xlu2 %2048, %v416_v5   ;;  %475 = vperm.xlu0 %2049, %v414_v6  }
  0x3b   : > { %487 = vperm.xlu1 %2050, %v417_v1  }
  0x3c   : > { %491 = vperm.xlu2 %2048, %v418_v4   ;;  %495 = vperm.xlu0 %2049, %v419_v24  }
  0x43   : > { %499 = vperm.xlu1 %2050, %v420_v21  }
  0x74   : > { %v444_v40 = vpop.permute.xlu2 %443 }
  0x75   : > { %v2260_v41 = vmul.f32 %v461_v39, %v444_v40 }
  0x7c   : > { %v449_v42 = vpop.permute.xlu2 %448 }
  0x7d   : > { %v467_v43 = vmul.f32 %v461_v39, %v449_v42 }
  0x85   : > { %v472_v44 = vpop.permute.xlu2 %471 }
  0x86   : > { %v503_v46 = vmul.f32 %v2262_v45, %v472_v44 }
  0x8c   : > { %v434_v47 = vpop.permute.xlu1 %433 }
  0x8d   : > { %v424_v48 = vpop.permute.xlu0 %423  ;;  %v464_v20 = vmul.f32 %v461_v39, %v434_v47 }
  0x8e   : > { %v462_v50 = vmul.f32 %v461_v39, %v424_v48  ;;  %v484_v51 = vpop.permute.xlu2 %483 }
  0x8f   : > { %v506_v54 = vmul.f32 %v2262_v45, %v484_v51 }
  0x90   : > { %v511_v52 = vadd.f32 %v503_v46, %v462_v50 }
  0x92   : > { %v2268_v53 = vadd.f32 %v2265_v49, %v511_v52 }
  0x94   : > { %v531_v55 = vand.u32 2139095040, %v2268_v53  ;;  %v439_v56 = vpop.permute.xlu1 %438  ;;  %v3494_v36 = vand.u32 2147483647, %v2268_v53 }
  0x95   : > { %v465_v57 = vmul.f32 %v461_v39, %v439_v56  ;;  %v429_v58 = vpop.permute.xlu0 %428 }
  0x96   : > { %v492_v59 = vpop.permute.xlu2 %491  ;;  %v532_v60 = vshrl.u32 %v531_v55, 23  ;;  %v463_v34 = vmul.f32 %v461_v39, %v429_v58  ;;  %v535_v52 = vand.u32 8388607, %v3494_v36 }
  0x97   : > { %v514_v61 = vadd.f32 %v506_v54, %v465_v57  ;;  %v508_v62 = vmul.f32 %v2262_v45, %v492_v59 }
  0x98   : > { %v1932_v2 = vadd.s32 4294967169, %v532_v60 }
  0x99   : > { %v2274_v63 = vadd.f32 %v2265_v49, %v514_v61  ;;  %v516_v1 = vadd.f32 %v508_v62, %v467_v43 }
  0x9a   : > { %v538_v11 = vadd.s32 1, %v1932_v2 }
  0x9b   : > { %v996_v3 = vand.u32 2139095040, %v2274_v63  ;;  %v2278_v4 = vadd.f32 %v2265_v49, %v516_v1  ;;  %v3509_v1 = vmov 2102212464  }
  0x9c   : > { %v459_v5 = vpop.permute.xlu1 %458  ;;  %vm539_vm2 = vcmp.gt.s32.totalorder %v538_v11, 0 }
  0x9d   : > { %3539 = vst [vmem:[#allocation5_spill] sm:$0xff] %v2278_v4  ;;  %v997_v6 = vshrl.u32 %v996_v3, 23  ;;  %v1306_v7 = vand.u32 2139095040, %v2278_v4  ;;  %v454_v8 = vpop.permute.xlu0 %453  ;;  %v2281_v9 = vmul.f32 %v461_v39, %v459_v5  ;;  %v540_v21 = vsel %vm539_vm2, %v538_v11, 0 }
  0x9e   : > { %v468_v10 = vmul.f32 %v461_v39, %v454_v8  ;;  %v2298_v29 = vand.u32 31, %v540_v21  ;;  %v2337_v54 = vshrl.u32 %v540_v21, 5  ;;  %v536_v5 = vor.u32 8388608, %v535_v52 }
  0x9f   : > { %v1941_v12 = vadd.s32 4294967169, %v997_v6  ;;  %v1307_v13 = vshrl.u32 %v1306_v7, 23  ;;  %v3561_v4 = vmov 2102212464  }
  0xa0   : > { %v2326_v39 = vsub.s32 32, %v2298_v29  ;;  %v557_v57 = vshll.u32 %v3525_v30, %v2298_v29  ;;  %v554_v2 = vshll.u32 %v3509_v1, %v2298_v29  ;;  %vm563_vm5 = vcmp.lt.s32.totalorder %v2337_v54, 4 }
  0xa1   : > { %v1003_v14 = vadd.s32 1, %v1941_v12  ;;  %v1947_v15 = vadd.s32 4294967169, %v1307_v13  ;;  %v3495_v12 = vmov 2131351028   ;;  %vm560_vm7 = vcmp.lt.s32.totalorder %v2337_v54, 1 }
  0xa2   : > { %v558_v59 = vshrl.u32 %v3503_v32, %v2326_v39  ;;  %v555_v11 = vshrl.u32 %v3525_v30, %v2326_v39  ;;  %v549_v13 = vshrl.u32 %v3495_v12, %v2326_v39  ;;  %vm562_vm8 = vcmp.lt.s32.totalorder %v2337_v54, 3 }
  0xa3   : > { %vm1004_vm3 = vcmp.gt.s32.totalorder %v1003_v14, 0  ;;  %v1313_v16 = vadd.s32 1, %v1947_v15  ;;  %vm561_vm10 = vcmp.lt.s32.totalorder %v2337_v54, 2 }
  0xa4   : > { %v2283_v17 = vsel %vm1004_vm3, %v1003_v14, 0  ;;  %v551_v14 = vshll.u32 %v3495_v12, %v2298_v29  ;;  %v559_v15 = vor.u32 %v558_v59, %v557_v57 }
  0xa5   : > { %v2286_v18 = vand.u32 31, %v2283_v17  ;;  %vm1314_vm4 = vcmp.gt.s32.totalorder %v1313_v16, 0  ;;  %v480_v19 = vpop.permute.xlu1 %479 }
  0xa6   : > { %v2288_v22 = vsel %vm1314_vm4, %v1313_v16, 0  ;;  %v505_v23 = vmul.f32 %v2262_v45, %v480_v19  ;;  %v476_v24 = vpop.permute.xlu0 %475 }
  0xa7   : > { %v2292_v25 = vsub.s32 32, %v2286_v18  ;;  %v2295_v26 = vand.u32 31, %v2288_v22  ;;  %v504_v28 = vmul.f32 %v2262_v45, %v476_v24  ;;  %v2302_v31 = vshll.u32 %v3525_v30, %v2286_v18 }
  0xa8   : > { %v513_v27 = vadd.f32 %v505_v23, %v464_v20 }
  0xa9   : > { %3540 = vst [vmem:[#allocation6_spill] sm:$0xff] %v2295_v26  ;;  %v2306_v33 = vshrl.u32 %v3503_v32, %v2292_v25  ;;  %v2309_v35 = vsub.s32 32, %v2295_v26  ;;  %v512_v40 = vadd.f32 %v504_v28, %v463_v34  ;;  %v2319_v42 = vshll.u32 %v3525_v30, %v2295_v26 }
  0xaa   : > { %v2315_v38 = vadd.f32 %v2265_v49, %v513_v27  ;;  %v552_v27 = vshrl.u32 %v3509_v1, %v2326_v39 }
  0xab   : > { %3541 = vst [vmem:[#allocation7_spill] sm:$0xff] %v2309_v35  ;;  %v1024_v37 = vor.u32 %v2306_v33, %v2302_v31  ;;  %v2323_v43 = vshrl.u32 %v3503_v32, %v2309_v35  ;;  %v2332_v48 = vadd.f32 %v2265_v49, %v512_v40  ;;  %v556_v40 = vor.u32 %v555_v11, %v554_v2 }
  0xac   : > { %3542 = vst [vmem:[#allocation8_spill] sm:$0xff] %v2319_v42  ;;  %v841_v44 = vand.u32 2139095040, %v2315_v38  ;;  %v553_v59 = vor.u32 %v552_v27, %v551_v14 }
  0xad   : > { %3543 = vst [vmem:[#allocation9_spill] sm:$0xff] %v2323_v43  ;;  %v488_v46 = vpop.permute.xlu1 %487  ;;  %v686_v58 = vand.u32 2139095040, %v2332_v48 }
  0xae   : > { %v507_v50 = vmul.f32 %v2262_v45, %v488_v46  ;;  %v496_v51 = vpop.permute.xlu0 %495  ;;  %v842_v55 = vshrl.u32 %v841_v44, 23 }
  0xaf   : > { %v509_v56 = vmul.f32 %v2262_v45, %v496_v51  ;;  %v687_v3 = vshrl.u32 %v686_v58, 23  ;;  %v573_v51 = vsel %vm563_vm5, %v559_v15, 1326507024 }
  0xb0   : > { %v1938_v60 = vadd.s32 4294967169, %v842_v55  ;;  %v515_v61 = vadd.f32 %v507_v50, %v2260_v41  ;;  %v3497_v41 = vmov 2475754826   ;;  %v2374_v50 = vshll.u32 %v536_v5, 8 }
  0xb1   : > { %v517_v62 = vadd.f32 %v509_v56, %v468_v10  ;;  %v548_v10 = vshll.u32 %v3497_v41, %v2298_v29  ;;  %v1935_v16 = vadd.s32 4294967169, %v687_v3  ;;  %v3499_v3 = vmov 683565275  }
  0xb2   : > { %v848_v6 = vadd.s32 1, %v1938_v60  ;;  %v2350_v7 = vadd.f32 %v2265_v49, %v515_v61  ;;  %v2416_v14 = vshrl.u32 %v2374_v50, 16 }
  0xb3   : > { %v2353_v8 = vadd.f32 %v2265_v49, %v517_v62  ;;  %v2381_v55 = vor.u32 %v549_v13, %v548_v10  ;;  %v574_v10 = vsel %vm562_vm8, %v556_v40, %v573_v51  ;;  %v2413_v13 = vand.u32 65535, %v2374_v50 }
  0xb4   : > { %vm849_vm6 = vcmp.gt.s32.totalorder %v848_v6, 0  ;;  %v1151_v19 = vand.u32 2139095040, %v2350_v7 }
  0xb5   : > { %3544 = vst [vmem:[#allocation10_spill] sm:$0xff] %v2353_v8  ;;  %v500_v20 = vpop.permute.xlu1 %499  ;;  %v2364_v21 = vsel %vm849_vm6, %v848_v6, 0  ;;  %v1461_v23 = vand.u32 2139095040, %v2353_v8  ;;  %v546_v6 = vshrl.u32 %v3497_v41, %v2326_v39  ;;  %v572_v11 = vsel %vm560_vm7, %v2381_v55, %v553_v59 }
  0xb6   : > { %v510_v24 = vmul.f32 %v2262_v45, %v500_v20  ;;  %v2371_v28 = vand.u32 31, %v2364_v21  ;;  %v1152_v34 = vshrl.u32 %v1151_v19, 23  ;;  %v693_v45 = vadd.s32 1, %v1935_v16 }
  0xb7   : > { %v1462_v44 = vshrl.u32 %v1461_v23, 23  ;;  %v1020_v23 = vshrl.u32 %v3525_v30, %v2292_v25  ;;  %v575_v27 = vsel %vm561_vm10, %v572_v11, %v574_v10 }
  0xb8   : > { %v518_v46 = vadd.f32 %v510_v24, %v2281_v9  ;;  %v2379_v52 = vsub.s32 32, %v2371_v28  ;;  %v1944_v56 = vadd.s32 4294967169, %v1152_v34  ;;  %v2388_v9 = vshll.u32 %v3525_v30, %v2371_v28 }
  0xb9   : > { %v1950_v57 = vadd.s32 4294967169, %v1462_v44  ;;  %vm694_vm9 = vcmp.gt.s32.totalorder %v693_v45, 0  ;;  %v569_v34 = vsel %vm563_vm5, %v556_v40, 920167782  ;;  %v2449_v40 = vshll.u32 %v3509_v1, %v2295_v26 }
  0xba   : > { %v2384_v58 = vadd.f32 %v2265_v49, %v518_v46  ;;  %v2392_v60 = vshrl.u32 %v3503_v32, %v2379_v52  ;;  %v1158_v61 = vadd.s32 1, %v1944_v56  ;;  %v545_v49 = vshll.u32 %v3499_v3, %v2298_v29 }
  0xbb   : > { %v1468_v62 = vadd.s32 1, %v1950_v57  ;;  %v2410_v29 = vshrl.u32 %v2283_v17, 5  ;;  %v695_v15 = vsel %vm694_vm9, %v693_v45, 0  ;;  %v544_v17 = vshrl.u32 %v3499_v3, %v2326_v39 }
  0xbc   : > { %3545 = vst [vmem:[#allocation11_spill] sm:$0xff] %v2384_v58  ;;  %v1616_v2 = vand.u32 2139095040, %v2384_v58  ;;  %vm1159_vm11 = vcmp.gt.s32.totalorder %v1158_v61, 0  ;;  %v547_v51 = vor.u32 %v546_v6, %v545_v49  ;;  %v1019_v45 = vshll.u32 %v3509_v1, %v2286_v18 }
  0xbd   : > { %vm1469_vm12 = vcmp.gt.s32.totalorder %v1468_v62, 0  ;;  %v2418_v16 = vsel %vm1159_vm11, %v1158_v61, 0  ;;  %vm1028_vm13 = vcmp.lt.s32.totalorder %v2410_v29, 4  ;;  %v2439_v56 = vand.u32 31, %v695_v15 }
  0xbe   : > { %v2420_v19 = vsel %vm1469_vm12, %v1468_v62, 0  ;;  %v1617_v20 = vshrl.u32 %v1616_v2, 23  ;;  %v2425_v24 = vand.u32 31, %v2418_v16  ;;  %v2445_v57 = vshrl.u32 %v2288_v22, 5 }
  0xbf   : > { %3546 = vst [vmem:[#allocation12_spill] sm:$0xff] %v2420_v19  ;;  %v2434_v44 = vand.u32 31, %v2420_v19  ;;  %v579_v62 = vand.u32 65535, %v575_v27  ;;  %v2454_v2 = vor.u32 %v1020_v23, %v1019_v45  ;;  %v565_v22 = vsel %vm563_vm5, %v553_v59, 2102212464 }
  0xc0   : > { %v1953_v46 = vadd.s32 4294967169, %v1617_v20  ;;  %v2442_v39 = vsub.s32 32, %v2425_v24  ;;  %v2458_v49 = vshll.u32 %v3525_v30, %v2425_v24  ;;  %v580_v23 = vshrl.u32 %v575_v27, 16 }
  0xc1   : > { %3547 = vst [vmem:[#allocation13_spill] sm:$0xff] %v2434_v44  ;;  %v2452_v61 = vsub.s32 32, %v2434_v44  ;;  %v2468_v11 = vshll.u32 %v3525_v30, %v2434_v44  ;;  %v2475_v45 = vsub.s32 32, %v2439_v56  ;;  %v568_v36 = vsel %vm560_vm7, %v547_v51, %v2381_v55 }
  0xc2   : > { %3549 = vst [vmem:[#allocation15_spill] sm:$0xff] %v2454_v2  ;;  %v2462_v6 = vshrl.u32 %v3503_v32, %v2442_v39  ;;  %v1623_v20 = vadd.s32 1, %v1953_v46  ;;  %v570_v5 = vsel %vm562_vm8, %v553_v59, %v569_v34  ;;  %v582_v46 = vmul.u32 %v580_v23, %v2413_v13 }
  0xc3   : > { %3548 = vst [vmem:[#allocation14_spill] sm:$0xff] %v2452_v61  ;;  %v2472_v10 = vshrl.u32 %v3503_v32, %v2452_v61  ;;  %v583_v27 = vmul.u32 %v579_v62, %v2416_v14  ;;  %v2491_v41 = vsel %vm1028_vm13, %v2454_v2, 920167782  ;;  %v2498_v47 = vsel %vm1028_vm13, %v1024_v37, 1326507024 }
  0xc4   : > { %3550 = vst [vmem:[#allocation16_spill] sm:$0xff] %v2468_v11  ;;  %vm1624_vm14 = vcmp.gt.s32.totalorder %v1623_v20, 0  ;;  %v2502_v59 = vshrl.u32 %v3525_v30, %v2309_v35  ;;  %v564_v3 = vsel %vm560_vm7, %v544_v17, %v547_v51  ;;  %v566_v31 = vsel %vm562_vm8, %v2381_v55, %v565_v22 }
  0xc5   : > { %3551 = vst [vmem:[#allocation17_spill] sm:$0xff] %v2472_v10  ;;  %v2504_v34 = vsel %vm1624_vm14, %v1623_v20, 0  ;;  %v571_v33 = vsel %vm561_vm10, %v568_v36, %v570_v5  ;;  %v2516_v37 = vshrl.u32 %v695_v15, 5  ;;  %v709_v0 = vshll.u32 %v3509_v1, %v2439_v56 }
  0xc6   : > { %3552 = vst [vmem:[#allocation18_spill] sm:$0xff] %v2491_v41  ;;  %v2507_v12 = vand.u32 31, %v2504_v34  ;;  %v581_v20 = vmul.u32 %v579_v62, %v2413_v13  ;;  %v585_v32 = vshll.u32 %v582_v46, 16  ;;  %v710_v58 = vshrl.u32 %v3525_v30, %v2475_v45 }
  0xc7   : > { %3553 = vst [vmem:[#allocation19_spill] sm:$0xff] %v2498_v47  ;;  %v584_v51 = vmul.u32 %v580_v23, %v2416_v14  ;;  %v587_v55 = vshll.u32 %v583_v27, 16  ;;  %v601_v36 = vand.u32 65535, %v571_v33  ;;  %v602_v5 = vshrl.u32 %v571_v33, 16 }
  0xc8   : > { %3554 = vst [vmem:[#allocation20_spill] sm:$0xff] %v2504_v34  ;;  %v2524_v17 = vsub.s32 32, %v2507_v12  ;;  %vm589_vm15 = vc.u32 %v581_v20, %v585_v32  ;;  %v591_v22 = vadd.s32 %v585_v32, %v581_v20  ;;  %v3557_v15 = vmov 1326507024  }
  0xc9   : > { %3555 = vst [vmem:[#allocation21_spill] sm:$0xff] %v2507_v12  ;;  %v713_v8 = vshrl.u32 %v3557_v15, %v2475_v45  ;;  %v2531_v62 = vshll.u32 %v3525_v30, %v2507_v12  ;;  %v3560_v34 = vmov 0   ;;  %v712_v23 = vshll.u32 %v3525_v30, %v2439_v56 }
  0xca   : > { %3556 = vst [vmem:[#allocation22_spill] sm:$0xff] %v2524_v17  ;;  %v2535_v1 = vshrl.u32 %v3557_v15, %v2524_v17  ;;  %v590_v11 = vsel %vm589_vm15, 1, %v3560_v34  ;;  %vm593_vm0 = vc.u32 %v591_v22, %v587_v55  ;;  %v604_v32 = vmul.u32 %v602_v5, %v2413_v13 }
  0xcb   : > { %3558 = vst [vmem:[#allocation23_spill] sm:$0xff] %v2531_v62  ;;  %v592_v10 = vadd.s32 %v590_v11, %v584_v51  ;;  %v711_v33 = vor.u32 %v710_v58, %v709_v0  ;;  %v594_v12 = vsel %vm593_vm0, 1, %v3560_v34  ;;  %v605_v26 = vmul.u32 %v601_v36, %v2416_v14 }
  0xcc   : > { %3559 = vst [vmem:[#allocation24_spill] sm:$0xff] %v2535_v1  ;;  %v586_v35 = vshrl.u32 %v582_v46, 16  ;;  %v603_v17 = vmul.u32 %v601_v36, %v2413_v13  ;;  %v607_v19 = vshll.u32 %v604_v32, 16  ;;  %v864_v30 = vshll.u32 %v3561_v4, %v2371_v28 }
  0xcd   : > { %v596_v15 = vadd.s32 %v594_v12, %v592_v10  ;;  %v714_v11 = vor.u32 %v713_v8, %v712_v23  ;;  %v567_v51 = vsel %vm561_vm10, %v564_v3, %v566_v31  ;;  %v606_v0 = vmul.u32 %v602_v5, %v2416_v14 }
  0xce   : > { %v609_v55 = vshll.u32 %v605_v26, 16  ;;  %vm611_vm1 = vc.u32 %v603_v17, %v607_v19  ;;  %v613_v22 = vadd.s32 %v607_v19, %v603_v17  ;;  %v3562_v20 = vmov 920167782  }
  0xcf   : > { %v597_v58 = vadd.s32 %v596_v15, %v586_v35  ;;  %v865_v46 = vshrl.u32 %v3562_v20, %v2379_v52  ;;  %vm718_vm2 = vcmp.lt.s32.totalorder %v2516_v37, 4  ;;  %v612_v12 = vsel %vm611_vm1, 1, %v3560_v34 }
  0xd0   : > { %v3527_v13 = vand.u32 2147483647, %v2332_v48  ;;  %v724_v8 = vsel %vm718_vm2, %v711_v33, 920167782  ;;  %v588_v54 = vshrl.u32 %v583_v27, 16  ;;  %v614_v3 = vadd.s32 %v612_v12, %v606_v0 }
  0xd1   : > { %vm615_vm3 = vc.u32 %v613_v22, %v609_v55  ;;  %v3563_v19 = vmov 683565275   ;;  %v3564_v31 = vmov 2475754826   ;;  %v728_v36 = vsel %vm718_vm2, %v714_v11, 1326507024 }
  0xd2   : > { %v616_v35 = vsel %vm615_vm3, 1, %v3560_v34  ;;  %v690_v14 = vand.u32 8388607, %v3527_v13  ;;  %v700_v10 = vshll.u32 %v3563_v19, %v2439_v56  ;;  %v701_v17 = vshrl.u32 %v3564_v31, %v2475_v45 }
  0xd3   : > { %v2567_v5 = vadd.s32 %v597_v58, %v588_v54  ;;  %v608_v23 = vshrl.u32 %v604_v32, 16  ;;  %v618_v27 = vadd.s32 %v616_v35, %v614_v3  ;;  %v703_v12 = vshll.u32 %v3564_v31, %v2439_v56 }
  0xd4   : > { %v691_v15 = vor.u32 8388608, %v690_v14  ;;  %v2569_v0 = vor.u32 %v701_v17, %v700_v10  ;;  %v3565_v13 = vmov 2131351028   ;;  %v610_v1 = vshrl.u32 %v605_v26, 16 }
  0xd5   : > { %v704_v62 = vshrl.u32 %v3565_v13, %v2475_v45  ;;  %v619_v61 = vadd.s32 %v618_v27, %v608_v23  ;;  %v706_v44 = vshll.u32 %v3565_v13, %v2439_v56  ;;  %v707_v11 = vshrl.u32 %v3561_v4, %v2475_v45 }
  0xd6   : > { %v2579_v58 = vadd.s32 %v613_v22, %v609_v55  ;;  %vm717_vm4 = vcmp.lt.s32.totalorder %v2516_v37, 3  ;;  %v2584_v54 = vshll.u32 %v691_v15, 8  ;;  %vm715_vm5 = vcmp.lt.s32.totalorder %v2516_v37, 1 }
  0xd7   : > { %v2581_v32 = vor.u32 %v704_v62, %v703_v12  ;;  %v620_v3 = vadd.s32 %v619_v61, %v610_v1  ;;  %v708_v35 = vor.u32 %v707_v11, %v706_v44  ;;  %v729_v26 = vsel %vm717_vm4, %v711_v33, %v728_v36 }
  0xd8   : > { %v2590_v56 = vshrl.u32 %v2364_v21, 5  ;;  %v2592_v14 = vor.u32 %v865_v46, %v864_v30  ;;  %vm623_vm6 = vc.u32 %v2567_v5, %v2579_v58  ;;  %vm716_vm7 = vcmp.lt.s32.totalorder %v2516_v37, 2 }
  0xd9   : > { %v723_v62 = vsel %vm715_vm5, %v2569_v0, %v2581_v32  ;;  %v624_v1 = vadd.s32 1, %v620_v3  ;;  %v725_v44 = vsel %vm717_vm4, %v708_v35, %v724_v8  ;;  %v727_v21 = vsel %vm715_vm5, %v2581_v32, %v708_v35 }
  0xda   : > { %v621_v30 = vmul.u32 %v2374_v50, %v567_v51  ;;  %v726_v61 = vsel %vm716_vm7, %v723_v62, %v725_v44  ;;  %v730_v33 = vsel %vm716_vm7, %v727_v21, %v729_v26  ;;  %v732_v55 = vand.u32 65535, %v2584_v54 }
  0xdb   : > { %v625_v22 = vsel %vm623_vm6, %v624_v1, %v620_v3  ;;  %v733_v46 = vshrl.u32 %v2584_v54, 16  ;;  %v734_v10 = vand.u32 65535, %v730_v33  ;;  %v735_v17 = vshrl.u32 %v730_v33, 16 }
  0xdc   : > { %vm873_vm8 = vcmp.lt.s32.totalorder %v2590_v56, 4  ;;  %v626_v8 = vadd.s32 %v625_v22, %v621_v30  ;;  %v756_v36 = vand.u32 65535, %v726_v61  ;;  %v757_v23 = vshrl.u32 %v726_v61, 16 }
  0xdd   : > { %v2617_v50 = vsel %vm873_vm8, %v2592_v14, 920167782  ;;  %v3566_v51 = vor.u32 %v2392_v60, %v2388_v9  ;;  %v737_v15 = vmul.u32 %v735_v17, %v732_v55  ;;  %v738_v12 = vmul.u32 %v734_v10, %v733_v46 }
  0xde   : > { %v2628_v11 = vshll.u32 %v3561_v4, %v2425_v24  ;;  %v627_v3 = vadd.s32 536870912, %v626_v8  ;;  %v759_v26 = vmul.u32 %v757_v23, %v732_v55  ;;  %v760_v62 = vmul.u32 %v756_v36, %v733_v46 }
  0xdf   : > { %v2624_v27 = vsel %vm873_vm8, %v3566_v51, 1326507024  ;;  %v699_v1 = vshrl.u32 %v3563_v19, %v2475_v45  ;;  %v720_v44 = vsel %vm718_vm2, %v708_v35, 2102212464  ;;  %v736_v9 = vmul.u32 %v734_v10, %v732_v55 }
  0xe0   : > { %v740_v60 = vshll.u32 %v737_v15, 16  ;;  %v628_v21 = vshrl.u32 %v627_v3, 30  ;;  %v739_v30 = vmul.u32 %v735_v17, %v733_v46  ;;  %v758_v61 = vmul.u32 %v756_v36, %v732_v55 }
  0xe1   : > { %v762_v33 = vshll.u32 %v759_v26, 16  ;;  %v742_v22 = vshll.u32 %v738_v12, 16  ;;  %v761_v42 = vmul.u32 %v757_v23, %v733_v46  ;;  %v764_v2 = vshll.u32 %v760_v62, 16 }
  0xe2   : > { %vm744_vm9 = vc.u32 %v736_v9, %v740_v60  ;;  %v746_v51 = vadd.s32 %v740_v60, %v736_v9  ;;  %v629_v43 = vshll.u32 %v628_v21, 30  ;;  %vm530_vm12 = vcmp.lt.s32.totalorder %v2268_v53, 0 }
  0xe3   : > { %v745_v41 = vsel %vm744_vm9, 1, %v3560_v34  ;;  %vm766_vm10 = vc.u32 %v758_v61, %v762_v33  ;;  %v768_v35 = vadd.s32 %v762_v33, %v758_v61  ;;  %v719_v55 = vsel %vm715_vm5, %v699_v1, %v2569_v0 }
  0xe4   : > { %v747_v47 = vadd.s32 %v745_v41, %v739_v30  ;;  %vm748_vm11 = vc.u32 %v746_v51, %v742_v22  ;;  %v767_v45 = vsel %vm766_vm10, 1, %v3560_v34  ;;  %v2637_v10 = vsub.s32 %v626_v8, %v629_v43 }
  0xe5   : > { %v749_v46 = vsel %vm748_vm11, 1, %v3560_v34  ;;  %v769_v17 = vadd.s32 %v767_v45, %v761_v42  ;;  %v741_v36 = vshrl.u32 %v737_v15, 16  ;;  %vm770_vm14 = vc.u32 %v768_v35, %v764_v2 }
  0xe6   : > { %v751_v23 = vadd.s32 %v749_v46, %v747_v47  ;;  %v838_v41 = vand.u32 2147483647, %v2315_v38  ;;  %vm631_vm15 = vcmp.lt.s32.totalorder %v2637_v10, 0  ;;  %v632_v3 = vsub.s32 0, %v2637_v10 }
  0xe7   : > { %v721_v43 = vsel %vm717_vm4, %v2581_v32, %v720_v44  ;;  %v771_v8 = vsel %vm770_vm14, 1, %v3560_v34  ;;  %v3567_v0 = vand.u32 2147483647, %v2268_v53  ;;  %v743_v42 = vshrl.u32 %v738_v12, 16 }
  0xe8   : > { %v752_v47 = vadd.s32 %v751_v23, %v741_v36  ;;  %v763_v15 = vshrl.u32 %v759_v26, 16  ;;  %v773_v9 = vadd.s32 %v771_v8, %v769_v17  ;;  %v1175_v60 = vshrl.u32 %v3562_v20, %v2442_v39 }
  0xe9   : > { %vm2652_vm0 = vcmp.le.f32.partialorder %v3567_v0, 0.7853982  ;;  %v633_v30 = vsel %vm631_vm15, %v632_v3, %v2637_v10  ;;  %v652_v61 = vsub.s32 4, %v628_v21  ;;  %v765_v33 = vshrl.u32 %v760_v62, 16 }
  0xea   : > { %v634_v32 = vclz %v633_v30  ;;  %v2659_v44 = vadd.s32 %v752_v47, %v743_v42  ;;  %v2661_v22 = vadd.s32 %v768_v35, %v764_v2  ;;  %v774_v51 = vadd.s32 %v773_v9, %v763_v15 }
  0xeb   : > { %v622_v45 = vadd.s32 %v2579_v58, %v2567_v5  ;;  %v722_v12 = vsel %vm716_vm7, %v719_v55, %v721_v43  ;;  %v845_v26 = vand.u32 8388607, %v838_v41  ;;  %v856_v46 = vshrl.u32 %v3564_v31, %v2379_v52 }
  0xec   : > { %v1933_v17 = vadd.s32 4294967294, %v634_v32  ;;  %v775_v62 = vadd.s32 %v774_v51, %v765_v33  ;;  %vm778_vm1 = vc.u32 %v2659_v44, %v2661_v22  ;;  %v855_v2 = vshll.u32 %v3563_v19, %v2371_v28 }
  0xed   : > { %v858_v5 = vshll.u32 %v3564_v31, %v2371_v28  ;;  %v859_v37 = vshrl.u32 %v3565_v13, %v2379_v52  ;;  %v861_v58 = vshll.u32 %v3565_v13, %v2371_v28  ;;  %v862_v35 = vshrl.u32 %v3561_v4, %v2379_v52 }
  0xee   : > { %vm1934_vm2 = vcmp.lt.s32.totalorder %v1933_v17, 0  ;;  %v653_v55 = vsel %vm530_vm12, %v652_v61, %v628_v21  ;;  %v776_v36 = vmul.u32 %v2584_v54, %v722_v12  ;;  %v779_v23 = vadd.s32 1, %v775_v62 }
  0xef   : > { %v637_v3 = vsel %vm1934_vm2, 0, %v1933_v17  ;;  %v857_v43 = vor.u32 %v856_v46, %v855_v2  ;;  %v860_v8 = vor.u32 %v859_v37, %v858_v5  ;;  %v863_v0 = vor.u32 %v862_v35, %v861_v58  ;;  %v380_v46 = vpop.f32.mrf.mxu1 }
  0xf0   : > { %v638_v42 = vsub.s32 32, %v637_v3  ;;  %v642_v47 = vsub.s32 4294967266, %v637_v3  ;;  %v780_v28 = vsel %vm778_vm1, %v779_v23, %v775_v62  ;;  %v846_v15 = vor.u32 8388608, %v845_v26  ;;  %v316_v26 = vpop.f32.mrf.mxu0 }
  0xf1   : > { %v655_v9 = vsel %vm2652_vm0, 0, %v653_v55  ;;  %v781_v30 = vadd.s32 %v780_v28, %v776_v36  ;;  %vm870_vm3 = vcmp.lt.s32.totalorder %v2590_v56, 1  ;;  %vm871_vm4 = vcmp.lt.s32.totalorder %v2590_v56, 2 }
  0xf2   : > { %v639_v54 = vshll.u32 %v2637_v10, %v637_v3  ;;  %v640_v21 = vshrl.u32 %v622_v45, %v638_v42  ;;  %v643_v61 = vadd.s32 127, %v642_v47  ;;  %vm872_vm5 = vcmp.lt.s32.totalorder %v2590_v56, 3 }
  0xf3   : > { %v782_v33 = vadd.s32 536870912, %v781_v30  ;;  %v878_v32 = vsel %vm870_vm3, %v857_v43, %v860_v8  ;;  %v880_v51 = vsel %vm872_vm5, %v863_v0, %v2617_v50  ;;  %v882_v12 = vsel %vm870_vm3, %v860_v8, %v863_v0 }
  0xf4   : > { %v641_v17 = vor.u32 %v640_v21, %v639_v54  ;;  %v644_v62 = vshll.u32 %v643_v61, 23  ;;  %v884_v10 = vsel %vm872_vm5, %v2592_v14, %v2624_v27  ;;  %v2706_v45 = vshll.u32 %v846_v15, 8 }
  0xf5   : > { %v2709_v2 = vshrl.u32 %v2418_v16, 5  ;;  %v2711_v5 = vadd.f32 %v380_v46, %v316_v26  ;;  %v2713_v50 = vshrl.u32 %v782_v33, 30  ;;  %v885_v37 = vsel %vm871_vm4, %v882_v12, %v884_v10 }
  0xf6   : > { %v2718_v58 = vor.u32 %v1175_v60, %v2628_v11  ;;  %v645_v35 = vor.u32 4788187, %v644_v62  ;;  %v672_v55 = vadd.s32 3, %v655_v9  ;;  %v881_v14 = vsel %vm871_vm4, %v878_v32, %v880_v51 }
  0xf7   : > { %v784_v27 = vshll.u32 %v2713_v50, 30  ;;  %v854_v16 = vshrl.u32 %v3563_v19, %v2379_v52  ;;  %v888_v36 = vshrl.u32 %v2706_v45, 16  ;;  %v889_v23 = vand.u32 65535, %v885_v37 }
  0xf8   : > { %v646_v3 = vand.u32 2147483647, %v645_v35  ;;  %v648_v42 = vcvt.s32.f32 %v641_v17  ;;  %v887_v47 = vand.u32 65535, %v2706_v45  ;;  %v890_v28 = vshrl.u32 %v885_v37, 16 }
  0xf9   : > { %v2727_v11 = vsub.s32 %v781_v30, %v784_v27  ;;  %v875_v60 = vsel %vm873_vm8, %v863_v0, 2102212464  ;;  %v893_v15 = vmul.u32 %v889_v23, %v888_v36  ;;  %v912_v9 = vshrl.u32 %v881_v14, 16 }
  0xfa   : > { %v649_v54 = vmul.f32 %v648_v42, %v646_v3  ;;  %v2731_v21 = vand.u32 3, %v672_v55  ;;  %v777_v52 = vadd.s32 %v2661_v22, %v2659_v44  ;;  %v892_v61 = vmul.u32 %v890_v28, %v887_v47 }
  0xfb   : > { %vm786_vm6 = vcmp.lt.s32.totalorder %v2727_v11, 0  ;;  %v787_v33 = vsub.s32 0, %v2727_v11  ;;  %v2739_v30 = vsel %vm870_vm3, %v854_v16, %v857_v43  ;;  %v911_v32 = vand.u32 65535, %v881_v14 }
  0xfc   : > { %v650_v51 = vxor.u32 2147483648, %v649_v54  ;;  %v2743_v0 = vsel %vm872_vm5, %v860_v8, %v875_v60  ;;  %v891_v12 = vmul.u32 %v889_v23, %v887_v47  ;;  %v895_v26 = vshll.u32 %v892_v61, 16 }
  0xfd   : > { %v788_v46 = vsel %vm786_vm6, %v787_v33, %v2727_v11  ;;  %v807_v44 = vsub.s32 4, %v2713_v50  ;;  %v897_v22 = vshll.u32 %v893_v15, 16  ;;  %v914_v17 = vmul.u32 %v912_v9, %v887_v47 }
  0xfe   : > { %v651_v62 = vsel %vm530_vm12, %v650_v51, %v649_v54  ;;  %v789_v10 = vclz %v788_v46  ;;  %vm899_vm7 = vc.u32 %v891_v12, %v895_v26  ;;  %v901_v43 = vadd.s32 %v895_v26, %v891_v12 }
  0xff   : > { %v2752_v37 = vsel %vm2652_vm0, %v2268_v53, %v651_v62  ;;  %v894_v8 = vmul.u32 %v890_v28, %v888_v36  ;;  %v913_v35 = vmul.u32 %v911_v32, %v887_v47  ;;  %v915_v55 = vmul.u32 %v911_v32, %v888_v36 }
 0x100   : > { %v656_v14 = vmul.f32 %v2752_v37, %v2752_v37  ;;  %v1936_v27 = vadd.s32 4294967294, %v789_v10  ;;  %v900_v16 = vsel %vm899_vm7, 1, %v3560_v34  ;;  %vm903_vm8 = vc.u32 %v901_v43, %v897_v22 }
 0x101   : > { %vm685_vm9 = vcmp.lt.s32.totalorder %v2332_v48, 0  ;;  %v896_v23 = vshrl.u32 %v892_v61, 16  ;;  %v902_v3 = vadd.s32 %v900_v16, %v894_v8  ;;  %v904_v42 = vsel %vm903_vm8, 1, %v3560_v34 }
 0x102   : > { %v917_v60 = vshll.u32 %v914_v17, 16  ;;  %v657_v1 = vmul.f32 -0.001358992, %v656_v14  ;;  %v664_v54 = vmul.f32 -0.00019511016, %v656_v14  ;;  %vm1937_vm10 = vcmp.lt.s32.totalorder %v1936_v27, 0 }
 0x103   : > { %v898_v28 = vshrl.u32 %v893_v15, 16  ;;  %vm1183_vm11 = vcmp.lt.s32.totalorder %v2709_v2, 4  ;;  %v792_v47 = vsel %vm1937_vm10, 0, %v1936_v27  ;;  %v906_v33 = vadd.s32 %v904_v42, %v902_v3  ;;  %v2765_v27 = vld [vmem:[%s3490_s2] ss:$0 sm:$0xff] }
 0x104   : > { %v916_v32 = vmul.u32 %v912_v9, %v888_v36  ;;  %v919_v51 = vshll.u32 %v915_v55, 16  ;;  %v658_v12 = vadd.f32 0.041655596, %v657_v1  ;;  %v665_v26 = vadd.f32 0.008332121, %v664_v54 }
 0x105   : > { %v793_v46 = vsub.s32 32, %v792_v47  ;;  %v794_v22 = vshll.u32 %v2727_v11, %v792_v47  ;;  %v797_v61 = vsub.s32 4294967266, %v792_v47  ;;  %v907_v62 = vadd.s32 %v906_v33, %v896_v23 }
 0x106   : > { %vm921_vm12 = vc.u32 %v913_v35, %v917_v60  ;;  %v923_v10 = vadd.s32 %v917_v60, %v913_v35  ;;  %v659_v43 = vmul.f32 %v658_v12, %v656_v14  ;;  %v666_v8 = vmul.f32 %v665_v26, %v656_v14 }
 0x107   : > { %v795_v16 = vshrl.u32 %v777_v52, %v793_v46  ;;  %v922_v15 = vsel %vm921_vm12, 1, %v3560_v34  ;;  %v798_v36 = vadd.s32 127, %v797_v61  ;;  %v908_v9 = vadd.s32 %v907_v62, %v898_v28 }
 0x108   : > { %v924_v3 = vadd.s32 %v922_v15, %v916_v32  ;;  %vm925_vm14 = vc.u32 %v923_v10, %v919_v51  ;;  %v660_v42 = vadd.f32 -0.4999988, %v659_v43  ;;  %v667_v11 = vadd.f32 -0.16666654, %v666_v8 }
 0x109   : > { %v918_v1 = vshrl.u32 %v914_v17, 16  ;;  %v926_v23 = vsel %vm925_vm14, 1, %v3560_v34  ;;  %v796_v35 = vor.u32 %v795_v16, %v794_v22  ;;  %v799_v60 = vshll.u32 %v798_v36, 23 }
 0x10a   : > { %v927_v54 = vadd.s32 %v923_v10, %v919_v51  ;;  %v928_v52 = vadd.s32 %v926_v23, %v924_v3  ;;  %v661_v47 = vmul.f32 %v660_v42, %v656_v14  ;;  %v668_v33 = vmul.f32 %v667_v11, %v656_v14 }
 0x10b   : > { %v808_v12 = vsel %vm685_vm9, %v807_v44, %v2713_v50  ;;  %v920_v26 = vshrl.u32 %v915_v55, 16  ;;  %v800_v46 = vor.u32 4788187, %v799_v60  ;;  %v2776_v17 = vsel %vm1183_vm11, %v2718_v58, 920167782  ;;  %v382_v60 = vpop.f32.mrf.mxu1 }
 0x10c   : > { %v929_v28 = vadd.s32 %v928_v52, %v918_v1  ;;  %v2771_v32 = vadd.s32 %v927_v54, %v908_v9  ;;  %vm933_vm15 = vc.u32 %v908_v9, %v927_v54  ;;  %v2780_v51 = vadd.f32 %v2765_v27, %v2711_v5 }
 0x10d   : > { %v669_v14 = vadd.f32 1.0, %v668_v33  ;;  %v3570_v22 = vand.u32 2147483647, %v2332_v48  ;;  %v801_v44 = vand.u32 2147483647, %v800_v46  ;;  %v803_v55 = vcvt.s32.f32 %v796_v35  ;;  %v318_v35 = vpop.f32.mrf.mxu0 }
 0x10e   : > { %v877_v61 = vsel %vm871_vm4, %v2739_v30, %v2743_v0  ;;  %v930_v62 = vadd.s32 %v929_v28, %v920_v26  ;;  %v662_v10 = vadd.f32 1.0, %v661_v47  ;;  %v1148_v8 = vand.u32 2147483647, %v2350_v7 }
 0x10f   : > { %vm2784_vm0 = vcmp.le.f32.partialorder %v3570_v22, 0.7853982  ;;  %v670_v43 = vmul.f32 %v669_v14, %v2752_v37  ;;  %v3573_v16 = vor.u32 %v2462_v6, %v2458_v49  ;;  %vm674_vm1 = vcmp.lt.s32.totalorder %v2731_v21, 2 }
 0x110   : > { %v810_v5 = vsel %vm2784_vm0, 0, %v808_v12  ;;  %v804_v36 = vmul.f32 %v803_v55, %v801_v44  ;;  %v934_v56 = vadd.s32 1, %v930_v62  ;;  %vm675_vm2 = vcmp.eq.s32.totalorder %v2731_v21, 0 }
 0x111   : > { %v1193_v15 = vsel %vm1183_vm11, %v3573_v16, 1326507024  ;;  %v676_v30 = vxor.u32 2147483648, %v670_v43  ;;  %vm678_vm3 = vcmp.eq.s32.totalorder %v2731_v21, 2  ;;  %v931_v0 = vmul.u32 %v2706_v45, %v877_v61 }
 0x112   : > { %v805_v37 = vxor.u32 2147483648, %v804_v36  ;;  %v827_v3 = vadd.s32 3, %v810_v5  ;;  %v935_v42 = vsel %vm933_vm15, %v934_v56, %v930_v62  ;;  %v1169_v49 = vshrl.u32 %v3565_v13, %v2442_v39 }
 0x113   : > { %v679_v6 = vxor.u32 2147483648, %v662_v10  ;;  %v936_v11 = vadd.s32 %v935_v42, %v931_v0  ;;  %v1155_v1 = vand.u32 8388607, %v1148_v8  ;;  %v1172_v23 = vshrl.u32 %v3561_v4, %v2442_v39 }
 0x114   : > { %vm671_vm4 = vweird.f32 %v2268_v53  ;;  %v806_v45 = vsel %vm685_vm9, %v805_v37, %v804_v36  ;;  %v1166_v9 = vshrl.u32 %v3564_v31, %v2442_v39  ;;  %v1168_v54 = vshll.u32 %v3564_v31, %v2425_v24 }
 0x115   : > { %v1171_v52 = vshll.u32 %v3565_v13, %v2425_v24  ;;  %v677_v47 = vsel %vm675_vm2, %v662_v10, %v676_v30  ;;  %v383_v33 = vadd.f32 %v382_v60, %v318_v35  ;;  %v2826_v12 = vsel %vm2784_vm0, %v2332_v48, %v806_v45 }
 0x116   : > { %v937_v26 = vadd.s32 536870912, %v936_v11  ;;  %v811_v46 = vmul.f32 %v2826_v12, %v2826_v12  ;;  %v1165_v28 = vshll.u32 %v3563_v19, %v2425_v24  ;;  %v2832_v14 = vor.u32 %v1169_v49, %v1168_v54 }
 0x117   : > { %v1173_v22 = vor.u32 %v1172_v23, %v1171_v52  ;;  %v680_v44 = vsel %vm678_vm3, %v679_v6, %v670_v43  ;;  %v2836_v55 = vand.u32 3, %v827_v3  ;;  %v1156_v50 = vor.u32 8388608, %v1155_v1 }
 0x118   : > { %v2838_v61 = vshrl.u32 %v937_v26, 30  ;;  %v681_v62 = vsel %vm674_vm1, %v677_v47, %v680_v44  ;;  %v812_v10 = vmul.f32 -0.001358992, %v811_v46  ;;  %v819_v5 = vmul.f32 -0.00019511016, %v811_v46 }
 0x119   : > { %v2842_v16 = vor.u32 %v1166_v9, %v1165_v28  ;;  %vm1180_vm5 = vcmp.lt.s32.totalorder %v2709_v2, 1  ;;  %vm1181_vm6 = vcmp.lt.s32.totalorder %v2709_v2, 2  ;;  %vm1182_vm7 = vcmp.lt.s32.totalorder %v2709_v2, 3 }
 0x11a   : > { %v939_v24 = vshll.u32 %v2838_v61, 30  ;;  %v813_v43 = vadd.f32 0.041655596, %v812_v10  ;;  %v820_v36 = vadd.f32 0.008332121, %v819_v5  ;;  %v1192_v56 = vsel %vm1180_vm5, %v2832_v14, %v1173_v22 }
 0x11b   : > { %v1194_v21 = vsel %vm1182_vm7, %v2718_v58, %v1193_v15  ;;  %v2855_v30 = vadd.f32 %v2765_v27, %v383_v33  ;;  %v2861_v3 = vshll.u32 %v1156_v50, 8  ;;  %v1188_v6 = vsel %vm1180_vm5, %v2842_v16, %v2832_v14 }
 0x11c   : > { %v2857_v0 = vsub.s32 %v936_v11, %v939_v24  ;;  %v1195_v37 = vsel %vm1181_vm6, %v1192_v56, %v1194_v21  ;;  %v814_v42 = vmul.f32 %v813_v43, %v811_v46  ;;  %v821_v49 = vmul.f32 %v820_v36, %v811_v46 }
 0x11d   : > { %v1190_v58 = vsel %vm1182_vm7, %v1173_v22, %v2776_v17  ;;  %v682_v15 = vsel %vm671_vm4, nan, %v681_v62  ;;  %vm833_vm8 = vcmp.eq.s32.totalorder %v2836_v55, 2  ;;  %v1199_v1 = vand.u32 65535, %v1195_v37 }
 0x11e   : > { %vm941_vm9 = vcmp.lt.s32.totalorder %v2857_v0, 0  ;;  %v942_v11 = vsub.s32 0, %v2857_v0  ;;  %v815_v23 = vadd.f32 -0.4999988, %v814_v42  ;;  %v822_v35 = vadd.f32 -0.16666654, %v821_v49 }
 0x11f   : > { %v1197_v60 = vand.u32 65535, %v2861_v3  ;;  %v1200_v45 = vshrl.u32 %v1195_v37, 16  ;;  %vm830_vm10 = vcmp.eq.s32.totalorder %v2836_v55, 0  ;;  %v1164_v53 = vshrl.u32 %v3563_v19, %v2442_v39 }
 0x120   : > { %v943_v9 = vsel %vm941_vm9, %v942_v11, %v2857_v0  ;;  %v1191_v17 = vsel %vm1181_vm6, %v1188_v6, %v1190_v58  ;;  %v1198_v54 = vshrl.u32 %v2861_v3, 16  ;;  %v816_v52 = vmul.f32 %v815_v23, %v811_v46 }
 0x121   : > { %v823_v47 = vmul.f32 %v822_v35, %v811_v46  ;;  %vm829_vm12 = vcmp.lt.s32.totalorder %v2836_v55, 2  ;;  %v944_v33 = vclz %v943_v9  ;;  %v1202_v26 = vmul.u32 %v1200_v45, %v1197_v60 }
 0x122   : > { %v1768_v28 = vadd.f32 %v682_v15, %v2780_v51  ;;  %vm826_vm14 = vweird.f32 %v2332_v48  ;;  %v962_v44 = vsub.s32 4, %v2838_v61  ;;  %v1185_v39 = vsel %vm1183_vm11, %v1173_v22, 2102212464 }
 0x123   : > { %v1203_v50 = vmul.u32 %v1199_v1, %v1198_v54  ;;  %v817_v62 = vadd.f32 1.0, %v816_v52  ;;  %v824_v10 = vadd.f32 1.0, %v823_v47  ;;  %v1939_v5 = vadd.s32 4294967294, %v944_v33 }
 0x124   : > { %v1201_v24 = vmul.u32 %v1199_v1, %v1197_v60  ;;  %v1204_v46 = vmul.u32 %v1200_v45, %v1198_v54  ;;  %v1205_v43 = vshll.u32 %v1202_v26, 16  ;;  %v1206_v36 = vshrl.u32 %v1202_v26, 16 }
 0x125   : > { %v1221_v56 = vand.u32 65535, %v1191_v17  ;;  %vm840_vm15 = vcmp.lt.s32.totalorder %v2315_v38, 0  ;;  %v825_v51 = vmul.f32 %v824_v10, %v2826_v12  ;;  %v834_v21 = vxor.u32 2147483648, %v817_v62 }
 0x126   : > { %vm1940_vm0 = vcmp.lt.s32.totalorder %v1939_v5, 0  ;;  %v1222_v37 = vshrl.u32 %v1191_v17, 16  ;;  %v1207_v49 = vshll.u32 %v1203_v50, 16  ;;  %vm1209_vm11 = vc.u32 %v1201_v24, %v1205_v43 }
 0x127   : > { %v947_v42 = vsel %vm1940_vm0, 0, %v1939_v5  ;;  %v1211_v22 = vadd.s32 %v1205_v43, %v1201_v24  ;;  %v831_v6 = vxor.u32 2147483648, %v825_v51  ;;  %v835_v58 = vsel %vm833_vm8, %v834_v21, %v825_v51 }
 0x128   : > { %v948_v15 = vsub.s32 32, %v947_v42  ;;  %v949_v11 = vshll.u32 %v2857_v0, %v947_v42  ;;  %vm2897_vm1 = vcmp.le.f32.partialorder %v838_v41, 0.7853982  ;;  %v952_v1 = vsub.s32 4294967266, %v947_v42 }
 0x129   : > { %v1210_v23 = vsel %vm1209_vm11, 1, %v3560_v34  ;;  %vm1213_vm2 = vc.u32 %v1211_v22, %v1207_v49  ;;  %v1224_v35 = vmul.u32 %v1222_v37, %v1197_v60  ;;  %v832_v45 = vsel %vm830_vm10, %v817_v62, %v831_v6 }
 0x12a   : > { %v950_v9 = vshrl.u32 %v2771_v32, %v948_v15  ;;  %v1212_v17 = vadd.s32 %v1210_v23, %v1204_v46  ;;  %v1214_v52 = vsel %vm1213_vm2, 1, %v3560_v34  ;;  %v836_v41 = vsel %vm829_vm12, %v832_v45, %v835_v58 }
 0x12b   : > { %v953_v0 = vadd.s32 127, %v952_v1  ;;  %v1223_v47 = vmul.u32 %v1221_v56, %v1197_v60  ;;  %v1225_v33 = vmul.u32 %v1221_v56, %v1198_v54  ;;  %v837_v26 = vsel %vm826_vm14, nan, %v836_v41 }
 0x12c   : > { %v951_v10 = vor.u32 %v950_v9, %v949_v11  ;;  %v1216_v5 = vadd.s32 %v1214_v52, %v1212_v17  ;;  %v1227_v24 = vshll.u32 %v1224_v35, 16  ;;  %v1769_v62 = vadd.f32 %v837_v26, %v2855_v30 }
 0x12d   : > { %v954_v32 = vshll.u32 %v953_v0, 23  ;;  %v1184_v46 = vsel %vm1180_vm5, %v1164_v53, %v2842_v16  ;;  %v1186_v55 = vsel %vm1182_vm7, %v2832_v14, %v1185_v39  ;;  %v1208_v43 = vshrl.u32 %v1203_v50, 16 }
 0x12e   : > { %v1217_v60 = vadd.s32 %v1216_v5, %v1206_v36  ;;  %v1226_v56 = vmul.u32 %v1222_v37, %v1198_v54  ;;  %vm1231_vm3 = vc.u32 %v1223_v47, %v1227_v24  ;;  %v1974_v48 = vpack.c.bf16 %v1769_v62, %v1768_v28  ;;  %v3576_v62 = vld [vmem:[#allocation19_spill] sm:$0xff] }
 0x12f   : > { %v955_v51 = vor.u32 4788187, %v954_v32  ;;  %v963_v21 = vsel %vm840_vm15, %v962_v44, %v2838_v61  ;;  %v1232_v30 = vsel %vm1231_vm3, 1, %v3560_v34  ;;  %v1229_v49 = vshll.u32 %v1225_v33, 16  ;;  %v3577_v32 = vld [vmem:[#allocation15_spill] sm:$0xff] }
 0x130   : > { %v1218_v42 = vadd.s32 %v1217_v60, %v1208_v43  ;;  %v1233_v22 = vadd.s32 %v1227_v24, %v1223_v47  ;;  %v1234_v16 = vadd.s32 %v1232_v30, %v1226_v56  ;;  %1975 = vst [vmem:[%s2923_s7] sm:$0xff] %v1974_v48   ;;  %v958_v53 = vcvt.s32.f32 %v951_v10  ;;  %v3578_v43 = vld [vmem:[#allocation18_spill] sm:$0xff] }
 0x131   : > { %v956_v14 = vand.u32 2147483647, %v955_v51  ;;  %v1187_v54 = vsel %vm1181_vm6, %v1184_v46, %v1186_v55  ;;  %v993_v28 = vand.u32 2147483647, %v2274_v63  ;;  %v965_v61 = vsel %vm2897_vm1, 0, %v963_v21 }
 0x132   : > { %v1228_v44 = vshrl.u32 %v1224_v35, 16  ;;  %vm1235_vm4 = vc.u32 %v1233_v22, %v1229_v49  ;;  %v1237_v39 = vadd.s32 %v1233_v22, %v1229_v49  ;;  %v1010_v6 = vshll.u32 %v3563_v19, %v2286_v18 }
 0x133   : > { %v959_v50 = vmul.f32 %v958_v53, %v956_v14  ;;  %v1236_v36 = vsel %vm1235_vm4, 1, %v3560_v34  ;;  %v1000_v37 = vand.u32 8388607, %v993_v28  ;;  %v1011_v15 = vshrl.u32 %v3564_v31, %v2292_v25 }
 0x134   : > { %v1238_v58 = vadd.s32 %v1236_v36, %v1234_v16  ;;  %v2936_v2 = vadd.s32 %v1237_v39, %v1218_v42  ;;  %vm1243_vm5 = vc.u32 %v1218_v42, %v1237_v39  ;;  %v1230_v1 = vshrl.u32 %v1225_v33, 16 }
 0x135   : > { %v960_v11 = vxor.u32 2147483648, %v959_v50  ;;  %v1013_v23 = vshll.u32 %v3564_v31, %v2286_v18  ;;  %v1014_v35 = vshrl.u32 %v3565_v13, %v2292_v25  ;;  %vm1338_vm6 = vcmp.lt.s32.totalorder %v2445_v57, 4 }
 0x136   : > { %v1239_v45 = vadd.s32 %v1238_v58, %v1228_v44  ;;  %v2945_v9 = vor.u32 %v1011_v15, %v1010_v6  ;;  %v1016_v17 = vshll.u32 %v3565_v13, %v2286_v18  ;;  %v1017_v52 = vshrl.u32 %v3561_v4, %v2292_v25  ;;  %v3580_v6 = vld [vmem:[#allocation8_spill] sm:$0xff] }
 0x137   : > { %v961_v41 = vsel %vm840_vm15, %v960_v11, %v959_v50  ;;  %v1001_v0 = vor.u32 8388608, %v1000_v37  ;;  %v2953_v47 = vor.u32 %v1014_v35, %v1013_v23  ;;  %vm1025_vm7 = vcmp.lt.s32.totalorder %v2410_v29, 1  ;;  %v3579_v37 = vld [vmem:[#allocation9_spill] sm:$0xff] }
 0x138   : > { %v964_v33 = vsel %vm2897_vm1, %v2315_v38, %v961_v41  ;;  %v1240_v26 = vadd.s32 %v1239_v45, %v1230_v1  ;;  %v2959_v10 = vor.u32 %v1017_v52, %v1016_v17  ;;  %vm1027_vm8 = vcmp.lt.s32.totalorder %v2410_v29, 3  ;;  %v3582_v35 = vld [vmem:[#allocation13_spill] sm:$0xff] }
 0x139   : > { %v2964_v18 = vor.u32 %v2502_v59, %v2449_v40  ;;  %v966_v5 = vmul.f32 %v964_v33, %v964_v33  ;;  %v1033_v24 = vsel %vm1025_vm7, %v2945_v9, %v2953_v47  ;;  %v1039_v12 = vsel %vm1027_vm8, %v3577_v32, %v3576_v62 }
 0x13a   : > { %v982_v46 = vadd.s32 3, %v965_v61  ;;  %v1244_v55 = vadd.s32 1, %v1240_v26  ;;  %v1035_v60 = vsel %vm1027_vm8, %v2959_v10, %v3578_v43  ;;  %v1037_v40 = vsel %vm1025_vm7, %v2953_v47, %v2959_v10 }
 0x13b   : > { %v967_v59 = vmul.f32 -0.001358992, %v966_v5  ;;  %v974_v56 = vmul.f32 -0.00019511016, %v966_v5  ;;  %v1241_v48 = vmul.u32 %v2861_v3, %v1187_v54  ;;  %vm1026_vm9 = vcmp.lt.s32.totalorder %v2410_v29, 2 }
 0x13c   : > { %v1245_v51 = vsel %vm1243_vm5, %v1244_v55, %v1240_v26  ;;  %v2987_v21 = vsel %vm1026_vm9, %v1033_v24, %v1035_v60  ;;  %v1040_v30 = vsel %vm1026_vm9, %v1037_v40, %v1039_v12  ;;  %v2991_v49 = vshll.u32 %v1001_v0, 8  ;;  %v3583_v0 = vld [vmem:[#allocation14_spill] sm:$0xff] }
 0x13d   : > { %v968_v22 = vadd.f32 0.041655596, %v967_v59  ;;  %v975_v16 = vadd.f32 0.008332121, %v974_v56  ;;  %v1246_v14 = vadd.s32 %v1245_v51, %v1241_v48  ;;  %v1044_v53 = vand.u32 65535, %v1040_v30 }
 0x13e   : > { %v983_v61 = vand.u32 3, %v982_v46  ;;  %v1042_v3 = vand.u32 65535, %v2991_v49  ;;  %v1043_v54 = vshrl.u32 %v2991_v49, 16  ;;  %v1045_v42 = vshrl.u32 %v1040_v30, 16 }
 0x13f   : > { %v2998_v44 = vsel %vm1338_vm6, %v2964_v18, 920167782  ;;  %v969_v39 = vmul.f32 %v968_v22, %v966_v5  ;;  %v976_v50 = vmul.f32 %v975_v16, %v966_v5  ;;  %v1247_v36 = vadd.s32 536870912, %v1246_v14 }
 0x140   : > { %v3581_v58 = vor.u32 %v3579_v37, %v3580_v6  ;;  %v1047_v11 = vmul.u32 %v1045_v42, %v1042_v3  ;;  %v1048_v1 = vmul.u32 %v1044_v53, %v1043_v54  ;;  %v1067_v23 = vshrl.u32 %v2987_v21, 16 }
 0x141   : > { %v3010_v45 = vshll.u32 %v3561_v4, %v3582_v35  ;;  %v970_v17 = vadd.f32 -0.4999988, %v969_v39  ;;  %v977_v52 = vadd.f32 -0.16666654, %v976_v50  ;;  %v3012_v41 = vshrl.u32 %v1247_v36, 30 }
 0x142   : > { %v3005_v15 = vsel %vm1338_vm6, %v3581_v58, 1326507024  ;;  %v3016_v26 = vshrl.u32 %v3562_v20, %v3583_v0  ;;  %vm985_vm10 = vcmp.eq.s32.totalorder %v983_v61, 0  ;;  %v1046_v24 = vmul.u32 %v1044_v53, %v1042_v3 }
 0x143   : > { %v1050_v62 = vshll.u32 %v1047_v11, 16  ;;  %v971_v32 = vmul.f32 %v970_v17, %v966_v5  ;;  %v978_v12 = vmul.f32 %v977_v52, %v966_v5  ;;  %vm984_vm12 = vcmp.lt.s32.totalorder %v983_v61, 2 }
 0x144   : > { %v1249_v46 = vshll.u32 %v3012_v41, 30  ;;  %v1066_v55 = vand.u32 65535, %v2987_v21  ;;  %v1052_v43 = vshll.u32 %v1048_v1, 16  ;;  %v1069_v40 = vmul.u32 %v1067_v23, %v1042_v3 }
 0x145   : > { %vm1054_vm14 = vc.u32 %v1046_v24, %v1050_v62  ;;  %v1056_v60 = vadd.s32 %v1050_v62, %v1046_v24  ;;  %v972_v59 = vadd.f32 1.0, %v971_v32  ;;  %v979_v56 = vadd.f32 1.0, %v978_v12 }
 0x146   : > { %vm988_vm15 = vcmp.eq.s32.totalorder %v983_v61, 2  ;;  %v1250_v48 = vsub.s32 %v1246_v14, %v1249_v46  ;;  %v1009_v51 = vshrl.u32 %v3563_v19, %v2292_v25  ;;  %v1049_v30 = vmul.u32 %v1045_v42, %v1043_v54 }
 0x147   : > { %v1055_v22 = vsel %vm1054_vm14, 1, %v3560_v34  ;;  %vm1058_vm0 = vc.u32 %v1056_v60, %v1052_v43  ;;  %v980_v5 = vmul.f32 %v979_v56, %v964_v33  ;;  %v989_v16 = vxor.u32 2147483648, %v972_v59 }
 0x148   : > { %vm1251_vm11 = vcmp.lt.s32.totalorder %v1250_v48, 0  ;;  %v1252_v53 = vsub.s32 0, %v1250_v48  ;;  %v1057_v21 = vadd.s32 %v1055_v22, %v1049_v30  ;;  %v1059_v39 = vsel %vm1058_vm0, 1, %v3560_v34 }
 0x149   : > { %v1070_v50 = vmul.u32 %v1066_v55, %v1043_v54  ;;  %v1072_v36 = vshll.u32 %v1069_v40, 16  ;;  %v986_v37 = vxor.u32 2147483648, %v980_v5  ;;  %v990_v6 = vsel %vm988_vm15, %v989_v16, %v980_v5 }
 0x14a   : > { %v1253_v58 = vsel %vm1251_vm11, %v1252_v53, %v1250_v48  ;;  %v1068_v14 = vmul.u32 %v1066_v55, %v1042_v3  ;;  %v1029_v25 = vsel %vm1025_vm7, %v1009_v51, %v2945_v9  ;;  %v1030_v33 = vsel %vm1028_vm13, %v2959_v10, 2102212464 }
 0x14b   : > { %v1254_v17 = vclz %v1253_v58  ;;  %v1061_v42 = vadd.s32 %v1059_v39, %v1057_v21  ;;  %vm1150_vm1 = vcmp.lt.s32.totalorder %v2350_v7, 0  ;;  %v987_v52 = vsel %vm985_vm10, %v972_v59, %v986_v37  ;;  %v3584_v39 = vld [vmem:[#allocation5_spill] sm:$0xff]  ;;  %v3585_v37 = vld [vmem:[#allocation12_spill] sm:$0xff] }
 0x14c   : > { %v1051_v24 = vshrl.u32 %v1047_v11, 16  ;;  %vm1076_vm2 = vc.u32 %v1068_v14, %v1072_v36  ;;  %v1078_v62 = vadd.s32 %v1072_v36, %v1068_v14  ;;  %v3033_v32 = vsel %vm984_vm12, %v987_v52, %v990_v6 }
 0x14d   : > { %v1945_v3 = vadd.s32 4294967294, %v1254_v17  ;;  %v1071_v12 = vmul.u32 %v1067_v23, %v1043_v54  ;;  %v1074_v46 = vshll.u32 %v1070_v50, 16  ;;  %v1031_v9 = vsel %vm1027_vm8, %v2953_v47, %v1030_v33 }
 0x14e   : > { %v1053_v55 = vshrl.u32 %v1048_v1, 16  ;;  %v1062_v10 = vadd.s32 %v1061_v42, %v1051_v24  ;;  %v1077_v43 = vsel %vm1076_vm2, 1, %v3560_v34  ;;  %v1272_v60 = vsub.s32 4, %v3012_v41 }
 0x14f   : > { %vm1946_vm13 = vcmp.lt.s32.totalorder %v1945_v3, 0  ;;  %v1079_v11 = vadd.s32 %v1077_v43, %v1071_v12  ;;  %vm1080_vm3 = vc.u32 %v1078_v62, %v1074_v46  ;;  %v1082_v51 = vadd.s32 %v1078_v62, %v1074_v46 }
 0x150   : > { %v1257_v59 = vsel %vm1946_vm13, 0, %v1945_v3  ;;  %v1063_v61 = vadd.s32 %v1062_v10, %v1053_v55  ;;  %v1081_v56 = vsel %vm1080_vm3, 1, %v3560_v34  ;;  %v1073_v30 = vshrl.u32 %v1069_v40, 16 }
 0x151   : > { %v1258_v54 = vsub.s32 32, %v1257_v59  ;;  %v1262_v23 = vsub.s32 4294967266, %v1257_v59  ;;  %v1083_v22 = vadd.s32 %v1081_v56, %v1079_v11  ;;  %v1259_v5 = vshll.u32 %v1250_v48, %v1257_v59 }
 0x152   : > { %v1075_v47 = vshrl.u32 %v1070_v50, 16  ;;  %v3041_v1 = vadd.s32 %v1082_v51, %v1063_v61  ;;  %vm1088_vm4 = vc.u32 %v1063_v61, %v1082_v51  ;;  %v1303_v36 = vand.u32 2147483647, %v3584_v39 }
 0x153   : > { %v1260_v16 = vshrl.u32 %v2936_v2, %v1258_v54  ;;  %v1263_v53 = vadd.s32 127, %v1262_v23  ;;  %v1084_v21 = vadd.s32 %v1083_v22, %v1073_v30  ;;  %v3046_v6 = vshrl.u32 %v3585_v37, 5  ;;  %v3590_v30 = vld [vmem:[#allocation17_spill] sm:$0xff]  ;;  %v3591_v22 = vld [vmem:[#allocation16_spill] sm:$0xff] }
 0x154   : > { %v3050_v58 = vor.u32 %v3016_v26, %v3010_v45  ;;  %vm3054_vm5 = vcmp.le.f32.partialorder %v1148_v8, 0.7853982  ;;  %v1032_v2 = vsel %vm1026_vm9, %v1029_v25, %v1031_v9  ;;  %v1273_v14 = vsel %vm1150_vm1, %v1272_v60, %v3012_v41  ;;  %v3588_v26 = vld [vmem:[#allocation7_spill] sm:$0xff]  ;;  %v3589_v8 = vld [vmem:[#allocation6_spill] sm:$0xff] }
 0x155   : > { %v1261_v48 = vor.u32 %v1260_v16, %v1259_v5  ;;  %v1264_v50 = vshll.u32 %v1263_v53, 23  ;;  %v1085_v17 = vadd.s32 %v1084_v21, %v1075_v47  ;;  %v1310_v45 = vand.u32 8388607, %v1303_v36 }
 0x156   : > { %v1321_v33 = vshrl.u32 %v3564_v31, %v3588_v26  ;;  %v1323_v42 = vshll.u32 %v3564_v31, %v3589_v8  ;;  %v1324_v29 = vshrl.u32 %v3565_v13, %v3588_v26  ;;  %v1086_v52 = vmul.u32 %v2991_v49, %v1032_v2 }
 0x157   : > { %v1265_v25 = vor.u32 4788187, %v1264_v50  ;;  %v1089_v24 = vadd.s32 1, %v1085_v17  ;;  %v1320_v41 = vshll.u32 %v3563_v19, %v3589_v8  ;;  %v1311_v62 = vor.u32 8388608, %v1310_v45 }
 0x158   : > { %v3074_v3 = vor.u32 %v1324_v29, %v1323_v42  ;;  %v1326_v12 = vshll.u32 %v3565_v13, %v3589_v8  ;;  %v1327_v46 = vshrl.u32 %v3561_v4, %v3588_v26  ;;  %v1268_v55 = vcvt.s32.f32 %v1261_v48 }
 0x159   : > { %v1266_v9 = vand.u32 2147483647, %v1265_v25  ;;  %v1275_v10 = vsel %vm3054_vm5, 0, %v1273_v14  ;;  %v1090_v49 = vsel %vm1088_vm4, %v1089_v24, %v1085_v17  ;;  %v1322_v60 = vor.u32 %v1321_v33, %v1320_v41  ;;  %v3593_v17 = vld [vmem:[#allocation20_spill] sm:$0xff]  ;;  %v3594_v24 = vld [vmem:[#allocation22_spill] sm:$0xff] }
 0x15a   : > { %v1091_v43 = vadd.s32 %v1090_v49, %v1086_v52  ;;  %v1328_v11 = vor.u32 %v1327_v46, %v1326_v12  ;;  %vm1337_vm7 = vcmp.lt.s32.totalorder %v2445_v57, 3  ;;  %vm1335_vm8 = vcmp.lt.s32.totalorder %v2445_v57, 1 }
 0x15b   : > { %v1269_v59 = vmul.f32 %v1268_v55, %v1266_v9  ;;  %v1349_v56 = vsel %vm1337_vm7, %v2964_v18, %v3005_v15  ;;  %v3089_v54 = vshll.u32 %v1311_v62, 8  ;;  %vm1493_vm9 = vcmp.lt.s32.totalorder %v3046_v6, 4 }
 0x15c   : > { %v1092_v23 = vadd.s32 536870912, %v1091_v43  ;;  %vm1336_vm10 = vcmp.lt.s32.totalorder %v2445_v57, 2  ;;  %v1347_v61 = vsel %vm1335_vm8, %v3074_v3, %v1328_v11  ;;  %v3099_v51 = vsel %vm1493_vm9, %v3050_v58, 920167782 }
 0x15d   : > { %v3592_v5 = vor.u32 %v3590_v30, %v3591_v22  ;;  %v1270_v15 = vxor.u32 2147483648, %v1269_v59  ;;  %v1350_v47 = vsel %vm1336_vm10, %v1347_v61, %v1349_v56  ;;  %v1292_v16 = vadd.s32 3, %v1275_v10 }
 0x15e   : > { %v3110_v53 = vshrl.u32 %v1092_v23, 30  ;;  %v1343_v21 = vsel %vm1335_vm8, %v1322_v60, %v3074_v3  ;;  %v1345_v37 = vsel %vm1337_vm7, %v1328_v11, %v2998_v44  ;;  %v1352_v48 = vand.u32 65535, %v3089_v54 }
 0x15f   : > { %v3106_v18 = vsel %vm1493_vm9, %v3592_v5, 1326507024  ;;  %v1271_v2 = vsel %vm1150_vm1, %v1270_v15, %v1269_v59  ;;  %v1354_v50 = vand.u32 65535, %v1350_v47  ;;  %v1355_v14 = vshrl.u32 %v1350_v47, 16 }
 0x160   : > { %v3122_v45 = vshrl.u32 %v3593_v17, 5  ;;  %v3127_v33 = vsel %vm3054_vm5, %v2350_v7, %v1271_v2  ;;  %v1094_v8 = vshll.u32 %v3110_v53, 30  ;;  %v1353_v42 = vshrl.u32 %v3089_v54, 16 }
 0x161   : > { %v1276_v44 = vmul.f32 %v3127_v33, %v3127_v33  ;;  %v1319_v29 = vshrl.u32 %v3563_v19, %v3588_v26  ;;  %v1346_v25 = vsel %vm1336_vm10, %v1343_v21, %v1345_v37  ;;  %v1357_v52 = vmul.u32 %v1355_v14, %v1352_v48 }
 0x162   : > { %v3139_v41 = vshrl.u32 %v3562_v20, %v3594_v24  ;;  %v3141_v40 = vand.u32 3, %v1292_v16  ;;  %v3143_v62 = vsub.s32 %v1091_v43, %v1094_v8  ;;  %v1358_v12 = vmul.u32 %v1354_v50, %v1353_v42 }
 0x163   : > { %v1277_v46 = vmul.f32 -0.001358992, %v1276_v44  ;;  %v1284_v9 = vmul.f32 -0.00019511016, %v1276_v44  ;;  %v3147_v55 = vsel %vm1335_vm8, %v1319_v29, %v1322_v60  ;;  %v1360_v26 = vshll.u32 %v1357_v52, 16 }
 0x164   : > { %vm1096_vm12 = vcmp.lt.s32.totalorder %v3143_v62, 0  ;;  %v1097_v10 = vsub.s32 0, %v3143_v62  ;;  %v1356_v49 = vmul.u32 %v1354_v50, %v1352_v48  ;;  %v1376_v59 = vand.u32 65535, %v1346_v25 }
 0x165   : > { %v1278_v20 = vadd.f32 0.041655596, %v1277_v46  ;;  %v1285_v56 = vadd.f32 0.008332121, %v1284_v9  ;;  %v1359_v23 = vmul.u32 %v1355_v14, %v1353_v42  ;;  %v1377_v61 = vshrl.u32 %v1346_v25, 16 }
 0x166   : > { %v1098_v43 = vsel %vm1096_vm12, %v1097_v10, %v3143_v62  ;;  %v1362_v30 = vshll.u32 %v1358_v12, 16  ;;  %vm1364_vm14 = vc.u32 %v1356_v49, %v1360_v26  ;;  %v1366_v22 = vadd.s32 %v1360_v26, %v1356_v49 }
 0x167   : > { %v1279_v5 = vmul.f32 %v1278_v20, %v1276_v44  ;;  %v1286_v15 = vmul.f32 %v1285_v56, %v1276_v44  ;;  %v1099_v60 = vclz %v1098_v43  ;;  %v1365_v47 = vsel %vm1364_vm14, 1, %v3560_v34 }
 0x168   : > { %vm1298_vm15 = vcmp.eq.s32.totalorder %v3141_v40, 2  ;;  %v1117_v16 = vsub.s32 4, %v3110_v53  ;;  %v1340_v21 = vsel %vm1338_vm6, %v1328_v11, 2102212464  ;;  %v1367_v37 = vadd.s32 %v1365_v47, %v1359_v23 }
 0x169   : > { %v1378_v2 = vmul.u32 %v1376_v59, %v1352_v48  ;;  %vm995_vm0 = vcmp.lt.s32.totalorder %v2274_v63, 0  ;;  %v1280_v50 = vadd.f32 -0.4999988, %v1279_v5  ;;  %v1287_v14 = vadd.f32 -0.16666654, %v1286_v15 }
 0x16a   : > { %v1942_v17 = vadd.s32 4294967294, %v1099_v60  ;;  %vm1368_vm11 = vc.u32 %v1366_v22, %v1362_v30  ;;  %vm1295_vm1 = vcmp.eq.s32.totalorder %v3141_v40, 0  ;;  %v1361_v8 = vshrl.u32 %v1357_v52, 16 }
 0x16b   : > { %v1369_v29 = vsel %vm1368_vm11, 1, %v3560_v34  ;;  %v1379_v25 = vmul.u32 %v1377_v61, %v1352_v48  ;;  %v1380_v46 = vmul.u32 %v1376_v59, %v1353_v42  ;;  %v1281_v9 = vmul.f32 %v1280_v50, %v1276_v44  ;;  %v385_v50 = vpop.f32.mrf.mxu1 }
 0x16c   : > { %v1288_v26 = vmul.f32 %v1287_v14, %v1276_v44  ;;  %vm1294_vm2 = vcmp.lt.s32.totalorder %v3141_v40, 2  ;;  %vm1943_vm6 = vcmp.lt.s32.totalorder %v1942_v17, 0  ;;  %v1371_v11 = vadd.s32 %v1369_v29, %v1367_v37  ;;  %v321_v37 = vpop.f32.mrf.mxu0 }
 0x16d   : > { %v1102_v10 = vsel %vm1943_vm6, 0, %v1942_v17  ;;  %v1363_v49 = vshrl.u32 %v1358_v12, 16  ;;  %v1381_v20 = vmul.u32 %v1377_v61, %v1353_v42  ;;  %v1382_v56 = vshll.u32 %v1379_v25, 16 }
 0x16e   : > { %v1282_v23 = vadd.f32 1.0, %v1281_v9  ;;  %v1289_v43 = vadd.f32 1.0, %v1288_v26  ;;  %v1103_v30 = vsub.s32 32, %v1102_v10  ;;  %v1384_v22 = vshll.u32 %v1380_v46, 16 }
 0x16f   : > { %v1104_v52 = vshll.u32 %v3143_v62, %v1102_v10  ;;  %v1107_v5 = vsub.s32 4294967266, %v1102_v10  ;;  %v1372_v15 = vadd.s32 %v1371_v11, %v1361_v8  ;;  %vm1386_vm13 = vc.u32 %v1378_v2, %v1382_v56  ;;  %v3595_v11 = vld [vmem:[#allocation10_spill] sm:$0xff] }
 0x170   : > { %v1290_v48 = vmul.f32 %v1289_v43, %v3127_v33  ;;  %v1299_v44 = vxor.u32 2147483648, %v1282_v23  ;;  %v1105_v59 = vshrl.u32 %v3041_v1, %v1103_v30  ;;  %v1387_v60 = vsel %vm1386_vm13, 1, %v3560_v34 }
 0x171   : > { %v1108_v47 = vadd.s32 127, %v1107_v5  ;;  %v1373_v12 = vadd.s32 %v1372_v15, %v1363_v49  ;;  %v1388_v42 = vadd.s32 %v1382_v56, %v1378_v2  ;;  %v1389_v61 = vadd.s32 %v1387_v60, %v1381_v20  ;;  %v3596_v56 = vld [vmem:[#allocation21_spill] sm:$0xff] }
 0x172   : > { %v1296_v14 = vxor.u32 2147483648, %v1290_v48  ;;  %v1300_v62 = vsel %vm1298_vm15, %v1299_v44, %v1290_v48  ;;  %v1106_v17 = vor.u32 %v1105_v59, %v1104_v52  ;;  %v1341_v33 = vsel %vm1337_vm7, %v3074_v3, %v1340_v21 }
 0x173   : > { %v1109_v8 = vshll.u32 %v1108_v47, 23  ;;  %v1118_v1 = vsel %vm995_vm0, %v1117_v16, %v3110_v53  ;;  %vm1390_vm3 = vc.u32 %v1388_v42, %v1384_v22  ;;  %v1392_v29 = vadd.s32 %v1388_v42, %v1384_v22 }
 0x174   : > { %v1297_v2 = vsel %vm1295_vm1, %v1282_v23, %v1296_v14  ;;  %v1383_v9 = vshrl.u32 %v1379_v25, 16  ;;  %v1391_v26 = vsel %vm1390_vm3, 1, %v3560_v34  ;;  %v1458_v10 = vand.u32 2147483647, %v3595_v11 }
 0x175   : > { %v3179_v49 = vsel %vm1294_vm2, %v1297_v2, %v1300_v62  ;;  %v1110_v3 = vor.u32 4788187, %v1109_v8  ;;  %v1393_v21 = vadd.s32 %v1391_v26, %v1389_v61  ;;  %v3181_v20 = vadd.s32 %v1392_v29, %v1373_v12 }
 0x176   : > { %v1639_v53 = vshll.u32 %v3561_v4, %v3596_v56  ;;  %vm3187_vm4 = vcmp.le.f32.partialorder %v993_v28, 0.7853982  ;;  %vm1398_vm5 = vc.u32 %v1373_v12, %v1392_v29  ;;  %v1465_v25 = vand.u32 8388607, %v1458_v10 }
 0x177   : > { %v1111_v40 = vand.u32 2147483647, %v1110_v3  ;;  %v1113_v23 = vcvt.s32.f32 %v1106_v17  ;;  %v1385_v43 = vshrl.u32 %v1380_v46, 16  ;;  %v1394_v30 = vadd.s32 %v1393_v21, %v1383_v9 }
 0x178   : > { %v3194_v22 = vor.u32 %v3139_v41, %v1639_v53  ;;  %v386_v52 = vadd.f32 %v385_v50, %v321_v37  ;;  %v1120_v5 = vsel %vm3187_vm4, 0, %v1118_v1  ;;  %v1342_v28 = vsel %vm1336_vm10, %v3147_v55, %v1341_v33  ;;  %v323_v37 = vpop.f32.mrf.mxu0  ;;  %v387_v50 = vpop.f32.mrf.mxu1 }
 0x179   : > { %v1114_v15 = vmul.f32 %v1113_v23, %v1111_v40  ;;  %v1395_v48 = vadd.s32 %v1394_v30, %v1385_v43  ;;  %v1466_v44 = vor.u32 8388608, %v1465_v25  ;;  %v1478_v59 = vshll.u32 %v3564_v31, %v3582_v35 }
 0x17a   : > { %v1476_v46 = vshrl.u32 %v3564_v31, %v3583_v0  ;;  %v1479_v41 = vshrl.u32 %v3565_v13, %v3583_v0  ;;  %v1481_v60 = vshll.u32 %v3565_v13, %v3582_v35  ;;  %v1482_v47 = vshrl.u32 %v3561_v4, %v3583_v0 }
 0x17b   : > { %vm1648_vm7 = vcmp.lt.s32.totalorder %v3122_v45, 4  ;;  %v1115_v57 = vxor.u32 2147483648, %v1114_v15  ;;  %v1137_v55 = vadd.s32 3, %v1120_v5  ;;  %v1399_v42 = vadd.s32 1, %v1395_v48 }
 0x17c   : > { %v1475_v61 = vshll.u32 %v3563_v19, %v3582_v35  ;;  %vm981_vm8 = vweird.f32 %v2315_v38  ;;  %v1396_v14 = vmul.u32 %v3089_v54, %v1342_v28  ;;  %v3216_v62 = vor.u32 %v1479_v41, %v1478_v59  ;;  %v3276_v41 = vld [vmem:[%s3490_s2] ss:$0 sm:$0xff] }
 0x17d   : > { %v3218_v17 = vor.u32 %v1482_v47, %v1481_v60  ;;  %v406_v33 = vadd.f32 %v2765_v27, %v386_v52  ;;  %v1116_v8 = vsel %vm995_vm0, %v1115_v57, %v1114_v15  ;;  %v1400_v1 = vsel %vm1398_vm5, %v1399_v42, %v1395_v48 }
 0x17e   : > { %v3224_v2 = vor.u32 %v1476_v46, %v1475_v61  ;;  %v992_v35 = vsel %vm981_vm8, nan, %v3033_v32  ;;  %v3230_v38 = vsel %vm3187_vm4, %v2274_v63, %v1116_v8  ;;  %v1401_v54 = vadd.s32 %v1400_v1, %v1396_v14 }
 0x17f   : > { %v3232_v9 = vshll.u32 %v1466_v44, 8  ;;  %v388_v26 = vadd.f32 %v387_v50, %v323_v37  ;;  %v1121_v27 = vmul.f32 %v3230_v38, %v3230_v38  ;;  %v3236_v3 = vand.u32 3, %v1137_v55 }
 0x180   : > { %vm1490_vm10 = vcmp.lt.s32.totalorder %v3046_v6, 1  ;;  %v1402_v12 = vadd.s32 536870912, %v1401_v54  ;;  %vm1491_vm12 = vcmp.lt.s32.totalorder %v3046_v6, 2  ;;  %vm1492_vm14 = vcmp.lt.s32.totalorder %v3046_v6, 3 }
 0x181   : > { %v1502_v32 = vsel %vm1490_vm10, %v3216_v62, %v3218_v17  ;;  %v1122_v29 = vmul.f32 -0.001358992, %v1121_v27  ;;  %v1129_v21 = vmul.f32 -0.00019511016, %v1121_v27  ;;  %v1498_v53 = vsel %vm1490_vm10, %v3224_v2, %v3216_v62 }
 0x182   : > { %v1504_v16 = vsel %vm1492_vm14, %v3050_v58, %v3106_v18  ;;  %v3253_v25 = vshrl.u32 %v1402_v12, 30  ;;  %v1500_v40 = vsel %vm1492_vm14, %v3218_v17, %v3099_v51  ;;  %v1507_v43 = vand.u32 65535, %v3232_v9 }
 0x183   : > { %v1505_v23 = vsel %vm1491_vm12, %v1502_v32, %v1504_v16  ;;  %v1123_v30 = vadd.f32 0.041655596, %v1122_v29  ;;  %v1130_v52 = vadd.f32 0.008332121, %v1129_v21  ;;  %v3265_v58 = vsel %vm1648_vm7, %v3194_v22, 920167782 }
 0x184   : > { %v1509_v5 = vand.u32 65535, %v1505_v23  ;;  %v1510_v28 = vshrl.u32 %v1505_v23, 16  ;;  %v3267_v18 = vadd.f32 %v992_v35, %v406_v33  ;;  %v1404_v15 = vshll.u32 %v3253_v25, 30  ;;  %v3599_v23 = vld [vmem:[#allocation11_spill] sm:$0xff] }
 0x185   : > { %v1508_v51 = vshrl.u32 %v3232_v9, 16  ;;  %v1124_v48 = vmul.f32 %v1123_v30, %v1121_v27  ;;  %v1131_v44 = vmul.f32 %v1130_v52, %v1121_v27  ;;  %v1501_v59 = vsel %vm1491_vm12, %v1498_v53, %v1500_v40 }
 0x186   : > { %v1512_v46 = vmul.u32 %v1510_v28, %v1507_v43  ;;  %v407_v60 = vadd.f32 %v3276_v41, %v388_v26  ;;  %vm1143_vm15 = vcmp.eq.s32.totalorder %v3236_v3, 2  ;;  %v1405_v47 = vsub.s32 %v1401_v54, %v1404_v15 }
 0x187   : > { %v1513_v57 = vmul.u32 %v1509_v5, %v1508_v51  ;;  %v1125_v55 = vadd.f32 -0.4999988, %v1124_v48  ;;  %v1132_v42 = vadd.f32 -0.16666654, %v1131_v44  ;;  %v1474_v61 = vshrl.u32 %v3563_v19, %v3583_v0 }
 0x188   : > { %v1515_v37 = vshll.u32 %v1512_v46, 16  ;;  %vm1140_vm0 = vcmp.eq.s32.totalorder %v3236_v3, 0  ;;  %vm1406_vm11 = vcmp.lt.s32.totalorder %v1405_v47, 0  ;;  %v1407_v50 = vsub.s32 0, %v1405_v47 }
 0x189   : > { %v1511_v14 = vmul.u32 %v1509_v5, %v1507_v43  ;;  %v1531_v33 = vand.u32 65535, %v1501_v59  ;;  %v1126_v8 = vmul.f32 %v1125_v55, %v1121_v27  ;;  %v1133_v1 = vmul.f32 %v1132_v42, %v1121_v27 }
 0x18a   : > { %vm1139_vm1 = vcmp.lt.s32.totalorder %v3236_v3, 2  ;;  %v1514_v35 = vmul.u32 %v1510_v28, %v1508_v51  ;;  %v1532_v26 = vshrl.u32 %v1501_v59, 16  ;;  %vm1136_vm2 = vweird.f32 %v2274_v63 }
 0x18b   : > { %v1408_v54 = vsel %vm1406_vm11, %v1407_v50, %v1405_v47  ;;  %v1517_v12 = vshll.u32 %v1513_v57, 16  ;;  %vm1519_vm6 = vc.u32 %v1511_v14, %v1515_v37  ;;  %v1521_v32 = vadd.s32 %v1515_v37, %v1511_v14 }
 0x18c   : > { %v1127_v0 = vadd.f32 1.0, %v1126_v8  ;;  %v1134_v29 = vadd.f32 1.0, %v1133_v1  ;;  %v1409_v21 = vclz %v1408_v54  ;;  %v1520_v53 = vsel %vm1519_vm6, 1, %v3560_v34 }
 0x18d   : > { %v1495_v16 = vsel %vm1493_vm9, %v3218_v17, 2102212464  ;;  %v1522_v27 = vadd.s32 %v1520_v53, %v1514_v35  ;;  %v1533_v40 = vmul.u32 %v1531_v33, %v1507_v43  ;;  %v1613_v30 = vand.u32 2147483647, %v3599_v23 }
 0x18e   : > { %v1135_v52 = vmul.f32 %v1134_v29, %v3230_v38  ;;  %v1144_v5 = vxor.u32 2147483648, %v1127_v0  ;;  %v1948_v28 = vadd.s32 4294967294, %v1409_v21  ;;  %vm1523_vm13 = vc.u32 %v1521_v32, %v1517_v12 }
 0x18f   : > { %v1516_v15 = vshrl.u32 %v1512_v46, 16  ;;  %v1524_v48 = vsel %vm1523_vm13, 1, %v3560_v34  ;;  %v1534_v44 = vmul.u32 %v1532_v26, %v1507_v43  ;;  %v1535_v59 = vmul.u32 %v1531_v33, %v1508_v51 }
 0x190   : > { %v1141_v55 = vxor.u32 2147483648, %v1135_v52  ;;  %v1145_v42 = vsel %vm1143_vm15, %v1144_v5, %v1135_v52  ;;  %vm1949_vm3 = vcmp.lt.s32.totalorder %v1948_v28, 0  ;;  %v1526_v17 = vadd.s32 %v1524_v48, %v1522_v27 }
 0x191   : > { %v1412_v37 = vsel %vm1949_vm3, 0, %v1948_v28  ;;  %v1518_v50 = vshrl.u32 %v1513_v57, 16  ;;  %v1536_v14 = vmul.u32 %v1532_v26, %v1508_v51  ;;  %v1537_v8 = vshll.u32 %v1534_v44, 16 }
 0x192   : > { %v1142_v38 = vsel %vm1140_vm0, %v1127_v0, %v1141_v55  ;;  %v1413_v1 = vsub.s32 32, %v1412_v37  ;;  %v1417_v35 = vsub.s32 4294967266, %v1412_v37  ;;  %v1539_v46 = vshll.u32 %v1535_v59, 16 }
 0x193   : > { %v1146_v43 = vsel %vm1139_vm1, %v1142_v38, %v1145_v42  ;;  %v1414_v33 = vshll.u32 %v1405_v47, %v1412_v37  ;;  %v1527_v54 = vadd.s32 %v1526_v17, %v1516_v15  ;;  %vm1541_vm9 = vc.u32 %v1533_v40, %v1537_v8  ;;  %v3600_v17 = vld [vmem:[#allocation24_spill] sm:$0xff]  ;;  %v3601_v37 = vld [vmem:[#allocation23_spill] sm:$0xff]  ;;  %v390_v38 = vpop.f32.mrf.mxu3 }
 0x194   : > { %v1147_v12 = vsel %vm1136_vm2, nan, %v1146_v43  ;;  %v1415_v32 = vshrl.u32 %v3181_v20, %v1413_v1  ;;  %v1418_v57 = vadd.s32 127, %v1417_v35  ;;  %v1542_v51 = vsel %vm1541_vm9, 1, %v3560_v34 }
 0x195   : > { %v1771_v26 = vadd.f32 %v1147_v12, %v407_v60  ;;  %v1528_v29 = vadd.s32 %v1527_v54, %v1518_v50  ;;  %v1543_v0 = vadd.s32 %v1537_v8, %v1533_v40  ;;  %v1544_v21 = vadd.s32 %v1542_v51, %v1536_v14  ;;  %v326_v8 = vpop.f32.mrf.mxu2 }
 0x196   : > { %v1416_v53 = vor.u32 %v1415_v32, %v1414_v33  ;;  %v1419_v27 = vshll.u32 %v1418_v57, 23  ;;  %v1494_v3 = vsel %vm1490_vm10, %v1474_v61, %v3224_v2  ;;  %v1496_v63 = vsel %vm1492_vm14, %v3216_v62, %v1495_v16 }
 0x197   : > { %vm1305_vm4 = vcmp.lt.s32.totalorder %v3584_v39, 0  ;;  %v1979_v20 = vpack.c.bf16 %v1771_v26, %v3267_v18  ;;  %v1538_v47 = vshrl.u32 %v1534_v44, 16  ;;  %vm1545_vm5 = vc.u32 %v1543_v0, %v1539_v46 }
 0x198   : > { %v1547_v60 = vadd.s32 %v1543_v0, %v1539_v46  ;;  %v1420_v52 = vor.u32 4788187, %v1419_v27  ;;  %v1540_v40 = vshrl.u32 %v1535_v59, 16  ;;  %v1546_v5 = vsel %vm1545_vm5, 1, %v3560_v34 }
 0x199   : > { %v1620_v28 = vand.u32 8388607, %v1613_v30  ;;  %1991 = vst [vmem:[%s2923_s7 + $0x8] sm:$0xff] %v1979_v20   ;;  %v1423_v2 = vcvt.s32.f32 %v1416_v53  ;;  %v1548_v61 = vadd.s32 %v1546_v5, %v1544_v21  ;;  %v1630_v18 = vshll.u32 %v3563_v19, %v3596_v56 }
 0x19a   : > { %v3314_v15 = vadd.s32 %v1547_v60, %v1528_v29  ;;  %vm1553_vm8 = vc.u32 %v1528_v29, %v1547_v60  ;;  %v1421_v62 = vand.u32 2147483647, %v1420_v52  ;;  %v1631_v16 = vshrl.u32 %v3564_v31, %v3594_v24 }
 0x19b   : > { %v1633_v48 = vshll.u32 %v3564_v31, %v3596_v56  ;;  %v1549_v44 = vadd.s32 %v1548_v61, %v1538_v47  ;;  %v1634_v59 = vshrl.u32 %v3565_v13, %v3594_v24  ;;  %v1636_v55 = vshll.u32 %v3565_v13, %v3596_v56  ;;  %v392_v61 = vpop.f32.mrf.mxu3 }
 0x19c   : > { %v1637_v42 = vshrl.u32 %v3561_v4, %v3594_v24  ;;  %v3602_v50 = vor.u32 %v3600_v17, %v3601_v37  ;;  %v1424_v1 = vmul.f32 %v1423_v2, %v1421_v62  ;;  %v1497_v31 = vsel %vm1491_vm12, %v1494_v3, %v1496_v63 }
 0x19d   : > { %v3335_v35 = vor.u32 %v1631_v16, %v1630_v18  ;;  %v391_v46 = vadd.f32 %v390_v38, %v326_v8  ;;  %v1550_v43 = vadd.s32 %v1549_v44, %v1540_v40  ;;  %v3337_v13 = vor.u32 %v1634_v59, %v1633_v48  ;;  %v328_v2 = vpop.f32.mrf.mxu2 }
 0x19e   : > { %v1658_v14 = vsel %vm1648_vm7, %v3602_v50, 1326507024  ;;  %v3339_v56 = vor.u32 %v1637_v42, %v1636_v55  ;;  %vm3343_vm10 = vcmp.le.f32.partialorder %v1303_v36, 0.7853982  ;;  %v1425_v33 = vxor.u32 2147483648, %v1424_v1 }
 0x19f   : > { %v1427_v54 = vsub.s32 4, %v3253_v25  ;;  %v1621_v12 = vor.u32 8388608, %v1620_v28  ;;  %v1551_v6 = vmul.u32 %v3232_v9, %v1497_v31  ;;  %v1554_v32 = vadd.s32 1, %v1550_v43 }
 0x1a0   : > { %vm1645_vm12 = vcmp.lt.s32.totalorder %v3122_v45, 1  ;;  %vm1646_vm14 = vcmp.lt.s32.totalorder %v3122_v45, 2  ;;  %v1426_v57 = vsel %vm1305_vm4, %v1425_v33, %v1424_v1  ;;  %vm1647_vm15 = vcmp.lt.s32.totalorder %v3122_v45, 3 }
 0x1a1   : > { %v1653_v36 = vsel %vm1645_vm12, %v3335_v35, %v3337_v13  ;;  %v1657_v9 = vsel %vm1645_vm12, %v3337_v13, %v3339_v56  ;;  %v1429_v51 = vsel %vm3343_vm10, %v3584_v39, %v1426_v57  ;;  %v1555_v26 = vsel %vm1553_vm8, %v1554_v32, %v1550_v43 }
 0x1a2   : > { %v1655_v0 = vsel %vm1647_vm15, %v3339_v56, %v3265_v58  ;;  %v1659_v21 = vsel %vm1647_vm15, %v3194_v22, %v1658_v14  ;;  %v1431_v53 = vmul.f32 %v1429_v51, %v1429_v51  ;;  %v1556_v27 = vadd.s32 %v1555_v26, %v1551_v6 }
 0x1a3   : > { %v1660_v3 = vsel %vm1646_vm14, %v1657_v9, %v1659_v21  ;;  %v3375_v63 = vshll.u32 %v1621_v12, 8  ;;  %vm1291_vm0 = vweird.f32 %v2350_v7  ;;  %v1428_v29 = vsel %vm1305_vm4, %v1427_v54, %v3253_v25 }
 0x1a4   : > { %v1664_v20 = vand.u32 65535, %v1660_v3  ;;  %v1665_v47 = vshrl.u32 %v1660_v3, 16  ;;  %v1432_v58 = vmul.f32 -0.001358992, %v1431_v53  ;;  %v1439_v60 = vmul.f32 -0.00019511016, %v1431_v53 }
 0x1a5   : > { %v1557_v52 = vadd.s32 536870912, %v1556_v27  ;;  %v3383_v22 = vsel %vm1646_vm14, %v1653_v36, %v1655_v0  ;;  %v408_v40 = vadd.f32 %v3276_v41, %v391_v46  ;;  %v1302_v5 = vsel %vm1291_vm0, nan, %v3179_v49 }
 0x1a6   : > { %v1662_v28 = vand.u32 65535, %v3375_v63  ;;  %v1663_v7 = vshrl.u32 %v3375_v63, 16  ;;  %v1430_v25 = vsel %vm3343_vm10, 0, %v1428_v29  ;;  %v1433_v62 = vadd.f32 0.041655596, %v1432_v58 }
 0x1a7   : > { %v1440_v18 = vadd.f32 0.008332121, %v1439_v60  ;;  %v3391_v16 = vshrl.u32 %v1557_v52, 30  ;;  %v1687_v59 = vshrl.u32 %v3383_v22, 16  ;;  %v3394_v55 = vadd.f32 %v1302_v5, %v408_v40 }
 0x1a8   : > { %v1667_v48 = vmul.u32 %v1665_v47, %v1662_v28  ;;  %v1668_v44 = vmul.u32 %v1664_v20, %v1663_v7  ;;  %v1434_v49 = vmul.f32 %v1433_v62, %v1431_v53  ;;  %v393_v37 = vadd.f32 %v392_v61, %v328_v2 }
 0x1a9   : > { %v1441_v42 = vmul.f32 %v1440_v18, %v1431_v53  ;;  %v1559_v17 = vshll.u32 %v3391_v16, 30  ;;  %v1447_v50 = vadd.s32 3, %v1430_v25  ;;  %v1666_v14 = vmul.u32 %v1664_v20, %v1662_v28 }
 0x1aa   : > { %v1670_v8 = vshll.u32 %v1667_v48, 16  ;;  %v1435_v38 = vadd.f32 -0.4999988, %v1434_v49  ;;  %v1669_v46 = vmul.u32 %v1665_v47, %v1663_v7  ;;  %v1672_v43 = vshll.u32 %v1668_v44, 16 }
 0x1ab   : > { %v1442_v1 = vadd.f32 -0.16666654, %v1441_v42  ;;  %v1560_v31 = vsub.s32 %v1556_v27, %v1559_v17  ;;  %v3397_v33 = vmul.u32 %v1687_v59, %v1662_v28  ;;  %vm1446_vm2 = vweird.f32 %v3584_v39 }
 0x1ac   : > { %vm1674_vm11 = vc.u32 %v1666_v14, %v1670_v8  ;;  %v1676_v4 = vadd.s32 %v1670_v8, %v1666_v14  ;;  %v1436_v54 = vmul.f32 %v1435_v38, %v1431_v53  ;;  %v1448_v32 = vand.u32 3, %v1447_v50 }
 0x1ad   : > { %v1443_v12 = vmul.f32 %v1442_v1, %v1431_v53  ;;  %vm1561_vm1 = vcmp.lt.s32.totalorder %v1560_v31, 0  ;;  %v1562_v6 = vsub.s32 0, %v1560_v31  ;;  %v1675_v57 = vsel %vm1674_vm11, 1, %v3560_v34 }
 0x1ae   : > { %vm1678_vm6 = vc.u32 %v1676_v4, %v1672_v43  ;;  %v1686_v36 = vand.u32 65535, %v3383_v22  ;;  %v1437_v9 = vadd.f32 1.0, %v1436_v54  ;;  %v1677_v21 = vadd.s32 %v1675_v57, %v1669_v46 }
 0x1af   : > { %v1444_v26 = vadd.f32 1.0, %v1443_v12  ;;  %v1563_v0 = vsel %vm1561_vm1, %v1562_v6, %v1560_v31  ;;  %v409_v27 = vadd.f32 %v3276_v41, %v393_v37  ;;  %v1671_v29 = vshrl.u32 %v1667_v48, 16 }
 0x1b0   : > { %v1564_v3 = vclz %v1563_v0  ;;  %v1679_v53 = vsel %vm1678_vm6, 1, %v3560_v34  ;;  %v1454_v47 = vxor.u32 2147483648, %v1437_v9  ;;  %v1692_v60 = vshll.u32 %v3397_v33, 16 }
 0x1b1   : > { %v1445_v20 = vmul.f32 %v1444_v26, %v1429_v51  ;;  %v1681_v58 = vadd.s32 %v1679_v53, %v1677_v21  ;;  %vm1453_vm13 = vcmp.eq.s32.totalorder %v1448_v32, 2  ;;  %v1688_v40 = vmul.u32 %v1686_v36, %v1662_v28 }
 0x1b2   : > { %v1951_v52 = vadd.s32 4294967294, %v1564_v3  ;;  %v1690_v5 = vmul.u32 %v1686_v36, %v1663_v7  ;;  %vm1449_vm3 = vcmp.lt.s32.totalorder %v1448_v32, 2  ;;  %vm1450_vm9 = vcmp.eq.s32.totalorder %v1448_v32, 0 }
 0x1b3   : > { %v1451_v22 = vxor.u32 2147483648, %v1445_v20  ;;  %v1455_v2 = vsel %vm1453_vm13, %v1454_v47, %v1445_v20  ;;  %v1682_v61 = vadd.s32 %v1681_v58, %v1671_v29  ;;  %v1673_v25 = vshrl.u32 %v1668_v44, 16 }
 0x1b4   : > { %vm1952_vm4 = vcmp.lt.s32.totalorder %v1951_v52, 0  ;;  %vm1696_vm5 = vc.u32 %v1688_v40, %v1692_v60  ;;  %v1691_v48 = vmul.u32 %v1687_v59, %v1663_v7  ;;  %v1694_v37 = vshll.u32 %v1690_v5, 16 }
 0x1b5   : > { %v1452_v62 = vsel %vm1450_vm9, %v1437_v9, %v1451_v22  ;;  %v1567_v18 = vsel %vm1952_vm4, 0, %v1951_v52  ;;  %v1697_v51 = vsel %vm1696_vm5, 1, %v3560_v34  ;;  %v1683_v50 = vadd.s32 %v1682_v61, %v1673_v25 }
 0x1b6   : > { %v1456_v49 = vsel %vm1449_vm3, %v1452_v62, %v1455_v2  ;;  %v1568_v42 = vsub.s32 32, %v1567_v18  ;;  %v1572_v17 = vsub.s32 4294967266, %v1567_v18  ;;  %v1698_v14 = vadd.s32 %v1692_v60, %v1688_v40 }
 0x1b7   : > { %v1457_v28 = vsel %vm1446_vm2, nan, %v1456_v49  ;;  %v1699_v8 = vadd.s32 %v1697_v51, %v1691_v48  ;;  %v1569_v1 = vshll.u32 %v1560_v31, %v1567_v18  ;;  %v1629_v7 = vshrl.u32 %v3563_v19, %v3594_v24 }
 0x1b8   : > { %v1773_v38 = vadd.f32 %v1457_v28, %v409_v27  ;;  %v1570_v44 = vshrl.u32 %v3314_v15, %v1568_v42  ;;  %v1573_v46 = vadd.s32 127, %v1572_v17  ;;  %v1650_v59 = vsel %vm1648_vm7, %v3339_v56, 2102212464 }
 0x1b9   : > { %vm1700_vm8 = vc.u32 %v1698_v14, %v1694_v37  ;;  %v1702_v43 = vadd.s32 %v1698_v14, %v1694_v37  ;;  %v1693_v31 = vshrl.u32 %v3397_v33, 16  ;;  %v1649_v24 = vsel %vm1645_vm12, %v1629_v7, %v3335_v35 }
 0x1ba   : > { %v1984_v39 = vpack.c.bf16 %v1773_v38, %v3394_v55  ;;  %v1571_v4 = vor.u32 %v1570_v44, %v1569_v1  ;;  %v1574_v54 = vshll.u32 %v1573_v46, 23  ;;  %v1701_v12 = vsel %vm1700_vm8, 1, %v3560_v34 }
 0x1bb   : > { %v1703_v6 = vadd.s32 %v1701_v12, %v1699_v8  ;;  %v3417_v15 = vadd.s32 %v1702_v43, %v1683_v50  ;;  %vm1708_vm10 = vc.u32 %v1683_v50, %v1702_v43  ;;  %v1651_v56 = vsel %vm1647_vm15, %v3337_v13, %v1650_v59 }
 0x1bc   : > { %1992 = vst [vmem:[%s2923_s7 + $0x10] sm:$0xff] %v1984_v39   ;;  %v1575_v19 = vor.u32 4788187, %v1574_v54  ;;  %v1695_v55 = vshrl.u32 %v1690_v5, 16  ;;  %v1578_v34 = vcvt.s32.f32 %v1571_v4  ;;  %v1652_v33 = vsel %vm1646_vm14, %v1649_v24, %v1651_v56 }
 0x1bd   : > { %v1704_v32 = vadd.s32 %v1703_v6, %v1693_v31  ;;  %v1706_v21 = vmul.u32 %v3375_v63, %v1652_v33  ;;  %vm1460_vm7 = vcmp.lt.s32.totalorder %v3595_v11, 0  ;;  %v1582_v35 = vsub.s32 4, %v3391_v16 }
 0x1be   : > { %v1576_v57 = vand.u32 2147483647, %v1575_v19  ;;  %vm3434_vm12 = vcmp.le.f32.partialorder %v1458_v10, 0.7853982  ;;  %vm1615_vm2 = vcmp.lt.s32.totalorder %v3599_v23, 0  ;;  %vm1601_vm3 = vweird.f32 %v3595_v11 }
 0x1bf   : > { %v1705_v36 = vadd.s32 %v1704_v32, %v1695_v55  ;;  %v1583_v20 = vsel %vm1460_vm7, %v1582_v35, %v3391_v16  ;;  %vm1614_vm6 = vcmp.le.f32.partialorder %v1613_v30, 0.7853982  ;;  %vm1756_vm5 = vweird.f32 %v3599_v23 }
 0x1c0   : > { %v1579_v9 = vmul.f32 %v1578_v34, %v1576_v57  ;;  %v1585_v52 = vsel %vm3434_vm12, 0, %v1583_v20 }
 0x1c1   : > { %v1709_v26 = vadd.s32 1, %v1705_v36  ;;  %v1602_v25 = vadd.s32 3, %v1585_v52 }
 0x1c2   : > { %v1580_v0 = vxor.u32 2147483648, %v1579_v9 }
 0x1c3   : > { %v1710_v27 = vsel %vm1708_vm10, %v1709_v26, %v1705_v36  ;;  %v1603_v42 = vand.u32 3, %v1602_v25 }
 0x1c4   : > { %v1581_v45 = vsel %vm1460_vm7, %v1580_v0, %v1579_v9  ;;  %v1711_v3 = vadd.s32 %v1710_v27, %v1706_v21  ;;  %v395_v9 = vpop.f32.mrf.mxu3 }
 0x1c5   : > { %v1584_v29 = vsel %vm3434_vm12, %v3595_v11, %v1581_v45  ;;  %vm1608_vm15 = vcmp.eq.s32.totalorder %v1603_v42, 2  ;;  %vm1605_vm11 = vcmp.eq.s32.totalorder %v1603_v42, 0  ;;  %vm1604_vm1 = vcmp.lt.s32.totalorder %v1603_v42, 2 }
 0x1c6   : > { %v1586_v53 = vmul.f32 %v1584_v29, %v1584_v29  ;;  %v1712_v63 = vadd.s32 536870912, %v1711_v3 }
 0x1c8   : > { %v1587_v47 = vmul.f32 -0.001358992, %v1586_v53  ;;  %v1594_v58 = vmul.f32 -0.00019511016, %v1586_v53  ;;  %v1713_v60 = vshrl.u32 %v1712_v63, 30 }
 0x1ca   : > { %v1588_v10 = vadd.f32 0.041655596, %v1587_v47  ;;  %v1595_v40 = vadd.f32 0.008332121, %v1594_v58  ;;  %v1714_v5 = vshll.u32 %v1713_v60, 30  ;;  %v1737_v32 = vsub.s32 4, %v1713_v60 }
 0x1cc   : > { %v1589_v22 = vmul.f32 %v1588_v10, %v1586_v53  ;;  %v1596_v2 = vmul.f32 %v1595_v40, %v1586_v53  ;;  %v1715_v61 = vsub.s32 %v1711_v3, %v1714_v5  ;;  %v1738_v36 = vsel %vm1615_vm2, %v1737_v32, %v1713_v60  ;;  %v397_v58 = vpop.f32.mrf.mxu3 }
 0x1cd   : > { %v1740_v21 = vsel %vm1614_vm6, 0, %v1738_v36 }
 0x1ce   : > { %v1590_v62 = vadd.f32 -0.4999988, %v1589_v22  ;;  %v1597_v18 = vadd.f32 -0.16666654, %v1596_v2  ;;  %vm1716_vm14 = vcmp.lt.s32.totalorder %v1715_v61, 0  ;;  %v1717_v48 = vsub.s32 0, %v1715_v61 }
 0x1cf   : > { %v1757_v3 = vadd.s32 3, %v1740_v21 }
 0x1d0   : > { %v1591_v51 = vmul.f32 %v1590_v62, %v1586_v53  ;;  %v1598_v49 = vmul.f32 %v1597_v18, %v1586_v53  ;;  %v1718_v16 = vsel %vm1716_vm14, %v1717_v48, %v1715_v61 }
 0x1d1   : > { %v1719_v17 = vclz %v1718_v16  ;;  %v1758_v20 = vand.u32 3, %v1757_v3 }
 0x1d2   : > { %v1592_v37 = vadd.f32 1.0, %v1591_v51  ;;  %v1599_v28 = vadd.f32 1.0, %v1598_v49 }
 0x1d3   : > { %v1954_v50 = vadd.s32 4294967294, %v1719_v17  ;;  %vm1763_vm13 = vcmp.eq.s32.totalorder %v1758_v20, 2  ;;  %vm1760_vm9 = vcmp.eq.s32.totalorder %v1758_v20, 0  ;;  %vm1759_vm4 = vcmp.lt.s32.totalorder %v1758_v20, 2 }
 0x1d4   : > { %v1600_v14 = vmul.f32 %v1599_v28, %v1584_v29  ;;  %v1609_v8 = vxor.u32 2147483648, %v1592_v37 }
 0x1d5   : > { %vm1955_vm0 = vcmp.lt.s32.totalorder %v1954_v50, 0 }
 0x1d6   : > { %v1606_v38 = vxor.u32 2147483648, %v1600_v14  ;;  %v1610_v1 = vsel %vm1608_vm15, %v1609_v8, %v1600_v14  ;;  %v1722_v44 = vsel %vm1955_vm0, 0, %v1954_v50 }
 0x1d7   : > { %v1723_v46 = vsub.s32 32, %v1722_v44  ;;  %v1727_v7 = vsub.s32 4294967266, %v1722_v44  ;;  %v1724_v39 = vshll.u32 %v1715_v61, %v1722_v44 }
 0x1d8   : > { %v1607_v59 = vsel %vm1605_vm11, %v1592_v37, %v1606_v38 }
 0x1d9   : > { %v1611_v43 = vsel %vm1604_vm1, %v1607_v59, %v1610_v1  ;;  %v1725_v4 = vshrl.u32 %v3417_v15, %v1723_v46  ;;  %v1728_v54 = vadd.s32 127, %v1727_v7  ;;  %v331_v15 = vpop.f32.mrf.mxu2 }
 0x1da   : > { %v396_v10 = vadd.f32 %v395_v9, %v331_v15  ;;  %v1612_v62 = vsel %vm1601_vm3, nan, %v1611_v43 }
 0x1db   : > { %v1726_v12 = vor.u32 %v1725_v4, %v1724_v39  ;;  %v1729_v31 = vshll.u32 %v1728_v54, 23 }
 0x1dc   : > { %v410_v25 = vadd.f32 %v3276_v41, %v396_v10 }
 0x1dd   : > { %v1730_v6 = vor.u32 4788187, %v1729_v31  ;;  %v1733_v24 = vcvt.s32.f32 %v1726_v12 }
 0x1de   : > { %v1774_v11 = vadd.f32 %v1612_v62, %v410_v25 }
 0x1df   : > { %v1731_v19 = vand.u32 2147483647, %v1730_v6 }
 0x1e1   : > { %v1734_v56 = vmul.f32 %v1733_v24, %v1731_v19  ;;  %v333_v47 = vpop.f32.mrf.mxu2 }
 0x1e2   : > { %v398_v22 = vadd.f32 %v397_v58, %v333_v47 }
 0x1e3   : > { %v1735_v55 = vxor.u32 2147483648, %v1734_v56 }
 0x1e4   : > { %v411_v48 = vadd.f32 %v3276_v41, %v398_v22 }
 0x1e5   : > { %v1736_v57 = vsel %vm1615_vm2, %v1735_v55, %v1734_v56 }
 0x1e6   : > { %v1739_v34 = vsel %vm1614_vm6, %v3599_v23, %v1736_v57 }
 0x1e7   : > { %v1741_v33 = vmul.f32 %v1739_v34, %v1739_v34 }
 0x1e9   : > { %v1742_v26 = vmul.f32 -0.001358992, %v1741_v33  ;;  %v1749_v0 = vmul.f32 -0.00019511016, %v1741_v33 }
 0x1eb   : > { %v1743_v35 = vadd.f32 0.041655596, %v1742_v26  ;;  %v1750_v27 = vadd.f32 0.008332121, %v1749_v0 }
 0x1ed   : > { %v1744_v13 = vmul.f32 %v1743_v35, %v1741_v33  ;;  %v1751_v45 = vmul.f32 %v1750_v27, %v1741_v33 }
 0x1ef   : > { %v1745_v29 = vadd.f32 -0.4999988, %v1744_v13  ;;  %v1752_v53 = vadd.f32 -0.16666654, %v1751_v45 }
 0x1f1   : > { %v1746_v63 = vmul.f32 %v1745_v29, %v1741_v33  ;;  %v1753_v30 = vmul.f32 %v1752_v53, %v1741_v33 }
 0x1f3   : > { %v1747_v52 = vadd.f32 1.0, %v1746_v63  ;;  %v1754_v60 = vadd.f32 1.0, %v1753_v30 }
 0x1f5   : > { %v1755_v40 = vmul.f32 %v1754_v60, %v1739_v34  ;;  %v1764_v5 = vxor.u32 2147483648, %v1747_v52 }
 0x1f7   : > { %v1761_v2 = vxor.u32 2147483648, %v1755_v40  ;;  %v1765_v61 = vsel %vm1763_vm13, %v1764_v5, %v1755_v40 }
 0x1f9   : > { %v1762_v18 = vsel %vm1760_vm9, %v1747_v52, %v1761_v2 }
 0x1fa   : > { %v1766_v51 = vsel %vm1759_vm4, %v1762_v18, %v1765_v61 }
 0x1fb   : > { %v1767_v49 = vsel %vm1756_vm5, nan, %v1766_v51 }
 0x1fc   : > { %v1775_v16 = vadd.f32 %v1767_v49, %v411_v48 }
 0x1fe   : > { %v1989_v42 = vpack.c.bf16 %v1775_v16, %v1774_v11 }
 0x200   : > { %1993 = vst [vmem:[%s2923_s7 + $0x18] sm:$0xff] %v1989_v42  }
 0x201   : > { %2080 = shalt.err (!%p2077_p3)
}
 0x202   : > { %s2125_s30 = smov 64   ;;  %s2126_s7 = smov 4  }
 0x203   : > { %1996 = dma.vmem_to_hbm [thread:$0]  (%p2195_p5), %s1806_s22, 512, %s1808_s14, %s1793_s15, %s2125_s30, %s2125_s30, %s2126_s7  }
 0x204 PF: > { %p2002_p4 = scmp.ge.s32.totalorder %s2115_s21, 2  ;;  %s1822_s9 = sand.u32 1, %s2103_s18  }
 0x205   : > { %s1823_s10 = scalar_lea.sflag [#allocation3], %s1822_s9 }
 0x206   : > { %p1999_p7 = pnand %p2002_p4, %p2199_p6 }
 0x208   : > { %p2000_p8 = pneg %p1999_p7 }
 0x20a   : > { %2098 = dma.done.wait (%p2000_p8), %s1823_s10, 512  }
 0x20b   : > { %2100 = vsyncadd (%p2000_p8), %s1823_s10, 4294966784  ;;  %p15_p9 = scmp.ge.s32.totalorder %s2182_s24, 4   ;;  %s3607_s18 = smov %s2107_s19 }
 0x20c   : > { %s3608_s19 = smov %s2111_s20  ;;  %s3609_s20 = smov %s2193_s27 }
 0x20d   : > { %s3610_s21 = smov %s2182_s24  ;;  %17 = sbr.rel (!%p15_p9) target bundleno = 3 (0x3), region = 78 }
 0x212   :  { %1829 = vsyncpa [#allocation3], 1 }
 0x213   :  { %1831 = vsyncpa [#allocation3 + $0x1], 1 }

</bundles_post_ra>
